<compile_context>
chip_gen: v7x
topology: tpu7x:2x2x1
jax: 0.10.0
libtpu: 0.0.40
codegen_flags: <defaults>
</compile_context>

<pallas_src>
import functools

import jax
import jax.numpy as jnp
from jax.experimental import pallas as pl
from jax.experimental.pallas import tpu as pltpu


def _round_up(x, m):
    return -(-x // m) * m


def _choose_time_block(length, max_block):
    t = max(1, min(max_block, length))
    while length % t:
        t -= 1
    return t


def _pad_gate_cols(a, h, hp):
    """(..., 3h) -> (..., 3hp): each r/z/n gate slab starts at offset g*hp
    (128-lane aligned) and is zero padded from h to hp columns."""
    pad = [(0, 0)] * (a.ndim - 1) + [(0, hp - h)]
    return jnp.concatenate(
        [jnp.pad(a[..., g * h:(g + 1) * h], pad) for g in range(3)], axis=-1)


# ---------------------------------------------------------------------------
# Kernel 1: bidirectional GRU recurrence.
#   grid = (2 directions, L // T time blocks)
#   direction axis: "parallel" (megacore), time axis: "arbitrary" (recurrence)
# ---------------------------------------------------------------------------
def _bigru_kernel(gi_ref, whh_ref, bhn_ref, out_ref, h_ref, *, t_block, hp):
    d = pl.program_id(0)            # 0 = forward, 1 = backward

    @pl.when(pl.program_id(1) == 0)
    def _init():                    # h0 = zeros at the start of each direction
        h_ref[...] = jnp.zeros_like(h_ref)

    whh = whh_ref[...]              # (Hp, 3Hp), resident across time blocks
    bhn = bhn_ref[...]              # (1, Hp)   only b_hn; other biases folded in gi

    def step(i, h):
        # forward walks i, backward walks T-1-i inside the (block-reversed) tile
        idx = i + d * (t_block - 1 - 2 * i)
        gi = gi_ref[idx]            # (Bp, 3Hp) = x_t @ W_ih^T + b_ih (+ b_hr, b_hz)
        gh = jnp.dot(h, whh, preferred_element_type=jnp.float32)   # (Bp, 3Hp)
        r = jax.nn.sigmoid(gi[:, :hp] + gh[:, :hp])
        z = jax.nn.sigmoid(gi[:, hp:2 * hp] + gh[:, hp:2 * hp])
        n = jnp.tanh(gi[:, 2 * hp:] + r * (gh[:, 2 * hp:] + bhn))
        h_new = (1.0 - z) * n + z * h
        out_ref[idx] = h_new
        return h_new

    h_ref[...] = jax.lax.fori_loop(0, t_block, step, h_ref[...], unroll=True)


# ---------------------------------------------------------------------------
# Kernel 2: attention + FC + sigmoid, fused; consumes the GRU output directly
# in its time-major padded layout (2, L, Bp, Hp).
# ---------------------------------------------------------------------------
def _atten_fc_kernel(o_ref, wf_ref, wb_ref, uom_ref, fcf_ref, fcb_ref, b_ref,
                     out_ref, *, seq_len, bp, hp):
    o_f = o_ref[0]                                  # (L, Bp, Hp) forward outputs
    o_b = o_ref[1]                                  # (L, Bp, Hp) backward outputs
    of2 = o_f.reshape(seq_len * bp, hp)
    ob2 = o_b.reshape(seq_len * bp, hp)
    # u = tanh([o_f, o_b] @ w_omega) with w_omega split per direction
    u = jnp.tanh(jnp.dot(of2, wf_ref[...], preferred_element_type=jnp.float32)
                 + jnp.dot(ob2, wb_ref[...], preferred_element_type=jnp.float32))
    u3 = u.reshape(seq_len, bp, -1)                 # (L, Bp, 2H)
    att = jnp.sum(u3 * uom_ref[...], axis=-1, keepdims=True)       # (L, Bp, 1)
    att = att - jnp.max(att, axis=0, keepdims=True)                # softmax over L
    p = jnp.exp(att)
    score = p / jnp.sum(p, axis=0, keepdims=True)                  # (L, Bp, 1)
    ctx_f = jnp.sum(o_f * score, axis=0)            # (Bp, Hp)
    ctx_b = jnp.sum(o_b * score, axis=0)            # (Bp, Hp)
    logit = (jnp.dot(ctx_f, fcf_ref[...], preferred_element_type=jnp.float32)
             + jnp.dot(ctx_b, fcb_ref[...], preferred_element_type=jnp.float32)
             + b_ref[...])
    out_ref[...] = jax.nn.sigmoid(logit)


# ---------------------------------------------------------------------------
# Public wrapper: full BiGRU_Atten2 forward (inference; dropout = identity).
# ---------------------------------------------------------------------------
def bigru_atten2_forward(params, token_ids, *, max_time_block=8):
    B, L = token_ids.shape
    H = params["whh_f"].shape[1]
    NL = params["fc_w"].shape[0]

    Hp = _round_up(H, 128)                      # lane-dense gate slabs
    Bp = _round_up(B, 8)                        # full f32 sublanes
    T = _choose_time_block(L, max_time_block)   # timesteps per grid step
    nb = L // T

    # TODO(synk): the embedding gather and the hoisted sequence-wide input
    # projection stay in plain XLA (per the perf review); a Pallas DMA-gather
    # kernel is not worthwhile at these sizes.  Dropout is identity at inference.
    emb = params["emb"].astype(jnp.float32)
    x_emb = jnp.take(emb, token_ids, axis=0).astype(jnp.float32)   # (B, L, E)

    def prep_direction(wih, whh, bih, bhh):
        wih = wih.astype(jnp.float32)
        whh = whh.astype(jnp.float32)
        bih = bih.astype(jnp.float32)
        bhh = bhh.astype(jnp.float32)
        # fold b_ih and the r/z halves of b_hh into the precomputed projection
        bias_fold = bih + jnp.concatenate(
            [bhh[:H], bhh[H:2 * H], jnp.zeros((H,), jnp.float32)])
        wihT_p = _pad_gate_cols(wih.T, H, Hp)                       # (E, 3Hp)
        bias_p = _pad_gate_cols(bias_fold[None, :], H, Hp)          # (1, 3Hp)
        whhT_p = jnp.pad(_pad_gate_cols(whh.T, H, Hp),
                         ((0, Hp - H), (0, 0)))                     # (Hp, 3Hp)
        bhn_p = jnp.pad(bhh[2 * H:][None, :], ((0, 0), (0, Hp - H)))  # (1, Hp)
        # one big (L*B, E) x (E, 3Hp) matmul, written directly time-major
        gi = jnp.einsum("ble,eg->lbg", x_emb, wihT_p) + bias_p      # (L, B, 3Hp)
        gi = jnp.pad(gi, ((0, 0), (0, Bp - B), (0, 0)))             # (L, Bp, 3Hp)
        return gi, whhT_p, bhn_p

    gi_f, whh_f, bhn_f = prep_direction(params["wih_f"], params["whh_f"],
                                        params["bih_f"], params["bhh_f"])
    gi_b, whh_b, bhn_b = prep_direction(params["wih_b"], params["whh_b"],
                                        params["bih_b"], params["bhh_b"])
    gi_all = jnp.stack([gi_f, gi_b])            # (2, L, Bp, 3Hp)
    whh_all = jnp.stack([whh_f, whh_b])         # (2, Hp, 3Hp)
    bhn_all = jnp.stack([bhn_f, bhn_b])         # (2, 1, Hp)

    # forward visits time blocks 0..nb-1, backward visits nb-1..0
    time_map = lambda d, t: (d, t + d * (nb - 1 - 2 * t), 0, 0)
    dir_map3 = lambda d, t: (d, 0, 0)

    rnn_kernel = functools.partial(_bigru_kernel, t_block=T, hp=Hp)
    # TODO(synk): on v6e/v7x, W_hh / h could be cast to bfloat16 for the MXU
    # (keeping f32 accumulation + f32 gate math); kept f32 here so the built-in
    # check matches the f32 reference tightly.
    rnn_out = pl.pallas_call(
        rnn_kernel,
        out_shape=jax.ShapeDtypeStruct((2, L, Bp, Hp), jnp.float32),
        grid_spec=pltpu.PrefetchScalarGridSpec(
            num_scalar_prefetch=0,
            grid=(2, nb),
            in_specs=[
                pl.BlockSpec((None, T, Bp, 3 * Hp), time_map),   # precomputed gi
                pl.BlockSpec((None, Hp, 3 * Hp), dir_map3),      # W_hh^T (resident)
                pl.BlockSpec((None, 1, Hp), dir_map3),           # b_hn
            ],
            out_specs=pl.BlockSpec((None, T, Bp, Hp), time_map),
            scratch_shapes=[pltpu.VMEM((Bp, Hp), jnp.float32)],  # hidden state
        ),
        compiler_params=pltpu.CompilerParams(
            dimension_semantics=("parallel", "arbitrary")),
    )(gi_all, whh_all, bhn_all)

    # ---- attention + FC + sigmoid (fused Pallas kernel) ---------------------
    w_omega = params["w_omega"].astype(jnp.float32)               # (2H, 2H)
    wf_p = jnp.pad(w_omega[:H], ((0, Hp - H), (0, 0)))            # (Hp, 2H)
    wb_p = jnp.pad(w_omega[H:], ((0, Hp - H), (0, 0)))            # (Hp, 2H)
    uom = params["u_omega"].astype(jnp.float32).reshape(1, 1, 2 * H)
    fc_w = params["fc_w"].astype(jnp.float32)                     # (NL, 2H)
    fcf_p = jnp.pad(fc_w[:, :H].T, ((0, Hp - H), (0, 0)))         # (Hp, NL)
    fcb_p = jnp.pad(fc_w[:, H:].T, ((0, Hp - H), (0, 0)))         # (Hp, NL)
    fc_b = params["fc_b"].astype(jnp.float32).reshape(1, NL)

    att_kernel = functools.partial(_atten_fc_kernel, seq_len=L, bp=Bp, hp=Hp)
    probs = pl.pallas_call(
        att_kernel,
        out_shape=jax.ShapeDtypeStruct((Bp, NL), jnp.float32),
    )(rnn_out, wf_p, wb_p, uom, fcf_p, fcb_p, fc_b)

    return probs[:B]


# ---------------------------------------------------------------------------
# Pure-JAX reference (mirrors the PyTorch module) for verification.
# ---------------------------------------------------------------------------
def _gru_direction_reference(x_emb, wih, whh, bih, bhh, reverse):
    B = x_emb.shape[0]
    H = whh.shape[1]
    xs = jnp.transpose(x_emb, (1, 0, 2))
    if reverse:
        xs = xs[::-1]

    def cell(h, x_t):
        gi = x_t @ wih.T + bih
        gh = h @ whh.T + bhh
        r = jax.nn.sigmoid(gi[:, :H] + gh[:, :H])
        z = jax.nn.sigmoid(gi[:, H:2 * H] + gh[:, H:2 * H])
        n = jnp.tanh(gi[:, 2 * H:] + r * gh[:, 2 * H:])
        h_new = (1.0 - z) * n + z * h
        return h_new, h_new

    h0 = jnp.zeros((B, H), jnp.float32)
    _, outs = jax.lax.scan(cell, h0, xs)
    if reverse:
        outs = outs[::-1]
    return jnp.transpose(outs, (1, 0, 2))


def bigru_atten2_reference(params, token_ids):
    x_emb = jnp.take(params["emb"].astype(jnp.float32), token_ids, axis=0)
    out_f = _gru_direction_reference(x_emb, params["wih_f"], params["whh_f"],
                                     params["bih_f"], params["bhh_f"], False)
    out_b = _gru_direction_reference(x_emb, params["wih_b"], params["whh_b"],
                                     params["bih_b"], params["bhh_b"], True)
    out = jnp.concatenate([out_f, out_b], axis=-1)            # (B, L, 2H)
    u = jnp.tanh(out @ params["w_omega"])
    att = u @ params["u_omega"]                               # (B, L, 1)
    score = jax.nn.softmax(att, axis=1)
    ctx = jnp.sum(out * score, axis=1)                        # (B, 2H)
    logit = ctx @ params["fc_w"].T + params["fc_b"]
    return jax.nn.sigmoid(logit)


def init_params(key, vocab_size, emb_size, h_size, num_label):
    ks = jax.random.split(key, 13)

    def unif(k, shape, scale):
        return jax.random.uniform(k, shape, minval=-scale, maxval=scale,
                                  dtype=jnp.float32)

    s = 1.0 / (h_size ** 0.5)
    emb = 0.1 * jax.random.normal(ks[0], (vocab_size + 1, emb_size), jnp.float32)
    emb = emb.at[0].set(0.0)                      # padding_idx = 0
    return {
        "emb": emb,
        # forward-direction GRU (torch layout: (3H, E)/(3H, H), gate order r|z|n)
        "wih_f": unif(ks[1], (3 * h_size, emb_size), s),
        "whh_f": unif(ks[2], (3 * h_size, h_size), s),
        "bih_f": unif(ks[3], (3 * h_size,), s),
        "bhh_f": unif(ks[4], (3 * h_size,), s),
        # backward-direction (reverse) GRU
        "wih_b": unif(ks[5], (3 * h_size, emb_size), s),
        "whh_b": unif(ks[6], (3 * h_size, h_size), s),
        "bih_b": unif(ks[7], (3 * h_size,), s),
        "bhh_b": unif(ks[8], (3 * h_size,), s),
        # attention + classifier
        "w_omega": unif(ks[9], (2 * h_size, 2 * h_size), 0.1),
        "u_omega": unif(ks[10], (2 * h_size, 1), 0.1),
        "fc_w": unif(ks[11], (num_label, 2 * h_size), 1.0 / ((2 * h_size) ** 0.5)),
        "fc_b": unif(ks[12], (num_label,), 1.0 / ((2 * h_size) ** 0.5)),
    }


if __name__ == "__main__":
    B, L, E, H, NL, V = 2, 16, 16, 32, 4, 20
    key = jax.random.PRNGKey(0)
    k_param, k_tok = jax.random.split(key)

    params = init_params(k_param, V, E, H, NL)
    token_ids = jax.random.randint(k_tok, (B, L), minval=0, maxval=V + 1)

    fwd = jax.jit(bigru_atten2_forward)
    probs = jax.block_until_ready(fwd(params, token_ids))

    ref = bigru_atten2_reference(params, token_ids)
    assert probs.shape == (B, NL), probs.shape
    assert jnp.allclose(probs, ref, atol=1e-4, rtol=1e-4), (probs, ref)
    print("KERNEL_OK")
</pallas_src>

<mosaic_0001>
module attributes {stable_mosaic.version = 11 : i64} {
  func.func @_bigru_kernel(%arg0: i32, %arg1: i32, %arg2: memref<1x8x8x384xf32, #tpu.memory_space<vmem>>, %arg3: memref<1x128x384xf32, #tpu.memory_space<vmem>>, %arg4: memref<1x1x128xf32, #tpu.memory_space<vmem>>, %arg5: memref<1x8x8x128xf32, #tpu.memory_space<vmem>>, %arg6: memref<8x128xf32, #tpu.memory_space<vmem>>) attributes {dimension_semantics = [#tpu.dimension_semantics<parallel>, #tpu.dimension_semantics<arbitrary>], iteration_bounds = array<i64: 2, 2>, scalar_prefetch = 0 : i64, scratch_operands = 1 : i64, tpu.core_type = #tpu.core_type<tc>, window_params = [{transform_indices = @transform_0, window_bounds = array<i64: 1, 8, 8, 384>}, {transform_indices = @transform_1, window_bounds = array<i64: 1, 128, 384>}, {transform_indices = @transform_2, window_bounds = array<i64: 1, 1, 128>}, {transform_indices = @transform_3, window_bounds = array<i64: 1, 8, 8, 128>}]} {
    %c0_i32 = arith.constant 0 : i32
    %0 = arith.cmpi eq, %arg1, %c0_i32 : i32
    %1 = arith.extui %0 : i1 to i32
    %c0_i32_0 = arith.constant 0 : i32
    %2 = arith.cmpi ne, %1, %c0_i32_0 : i32
    scf.if %2 {
      %cst_106 = arith.constant 0.000000e+00 : f32
      %329 = vector.broadcast %cst_106 : f32 to vector<8x128xf32>
      %c0_107 = arith.constant 0 : index
      %c0_108 = arith.constant 0 : index
      %330 = vector.load %arg6[%c0_107, %c0_108] : memref<8x128xf32, #tpu.memory_space<vmem>>, vector<8x128xf32>
      tpu.vector_store %arg6[%c0_107, %c0_108], %329 {strides = array<i32>} : memref<8x128xf32, #tpu.memory_space<vmem>>, vector<8x128xf32>,
    } else {
    }
    %c0 = arith.constant 0 : index
    %c0_1 = arith.constant 0 : index
    %c0_2 = arith.constant 0 : index
    %3 = vector.load %arg3[%c0, %c0_1, %c0_2] : memref<1x128x384xf32, #tpu.memory_space<vmem>>, vector<1x128x384xf32>
    %4 = vector.shape_cast %3 : vector<1x128x384xf32> to vector<128x384xf32>
    %c0_3 = arith.constant 0 : index
    %c0_4 = arith.constant 0 : index
    %c0_5 = arith.constant 0 : index
    %5 = vector.load %arg4[%c0_3, %c0_4, %c0_5] : memref<1x1x128xf32, #tpu.memory_space<vmem>>, vector<1x1x128xf32>
    %6 = vector.shape_cast %5 : vector<1x1x128xf32> to vector<1x128xf32>
    %c0_6 = arith.constant 0 : index
    %c0_7 = arith.constant 0 : index
    %7 = vector.load %arg6[%c0_6, %c0_7] : memref<8x128xf32, #tpu.memory_space<vmem>>, vector<8x128xf32>
    %c0_i32_8 = arith.constant 0 : i32
    %c2_i32 = arith.constant 2 : i32
    %8 = arith.muli %c2_i32, %c0_i32_8 : i32
    %c7_i32 = arith.constant 7 : i32
    %9 = arith.subi %c7_i32, %8 : i32
    %10 = arith.muli %arg0, %9 : i32
    %11 = arith.addi %c0_i32_8, %10 : i32
    %c0_9 = arith.constant 0 : index
    %12 = arith.index_cast %11 : i32 to index
    %c0_10 = arith.constant 0 : index
    %c0_11 = arith.constant 0 : index
    %13 = vector.load %arg2[%c0_9, %12, %c0_10, %c0_11] : memref<1x8x8x384xf32, #tpu.memory_space<vmem>>, vector<1x1x8x384xf32>
    %14 = vector.shape_cast %13 : vector<1x1x8x384xf32> to vector<8x384xf32>
    %cst = arith.constant dense<0.000000e+00> : vector<8x384xf32>
    %15 = tpu.matmul %7, %4, %cst {dimension_numbers = #tpu.dot_dimension_numbers<[1], [0], [0], [1], [0, 0, 1, 1], [], []>} : vector<8x128xf32>, vector<128x384xf32>, vector<8x384xf32> -> vector<8x384xf32>
    %16 = vector.extract_strided_slice %14 {offsets = [0, 0], sizes = [8, 128], strides = [1, 1]} : vector<8x384xf32> to vector<8x128xf32>
    %17 = vector.extract_strided_slice %15 {offsets = [0, 0], sizes = [8, 128], strides = [1, 1]} : vector<8x384xf32> to vector<8x128xf32>
    %18 = arith.addf %16, %17 : vector<8x128xf32>
    %19 = arith.negf %18 : vector<8x128xf32>
    %20 = math.exp %19 : vector<8x128xf32>
    %cst_12 = arith.constant 1.000000e+00 : f32
    %21 = vector.broadcast %cst_12 : f32 to vector<8x128xf32>
    %22 = arith.addf %21, %20 : vector<8x128xf32>
    %23 = arith.divf %21, %22 : vector<8x128xf32>
    %24 = vector.extract_strided_slice %14 {offsets = [0, 128], sizes = [8, 128], strides = [1, 1]} : vector<8x384xf32> to vector<8x128xf32>
    %25 = vector.extract_strided_slice %15 {offsets = [0, 128], sizes = [8, 128], strides = [1, 1]} : vector<8x384xf32> to vector<8x128xf32>
    %26 = arith.addf %24, %25 : vector<8x128xf32>
    %27 = arith.negf %26 : vector<8x128xf32>
    %28 = math.exp %27 : vector<8x128xf32>
    %cst_13 = arith.constant 1.000000e+00 : f32
    %29 = vector.broadcast %cst_13 : f32 to vector<8x128xf32>
    %30 = arith.addf %29, %28 : vector<8x128xf32>
    %31 = arith.divf %29, %30 : vector<8x128xf32>
    %32 = vector.extract_strided_slice %14 {offsets = [0, 256], sizes = [8, 128], strides = [1, 1]} : vector<8x384xf32> to vector<8x128xf32>
    %33 = vector.extract_strided_slice %15 {offsets = [0, 256], sizes = [8, 128], strides = [1, 1]} : vector<8x384xf32> to vector<8x128xf32>
    %34 = vector.broadcast %6 : vector<1x128xf32> to vector<8x128xf32>
    %35 = arith.addf %33, %34 : vector<8x128xf32>
    %36 = arith.mulf %23, %35 : vector<8x128xf32>
    %37 = arith.addf %32, %36 : vector<8x128xf32>
    %38 = math.tanh %37 : vector<8x128xf32>
    %cst_14 = arith.constant 1.000000e+00 : f32
    %39 = vector.broadcast %cst_14 : f32 to vector<8x128xf32>
    %40 = arith.subf %39, %31 : vector<8x128xf32>
    %41 = arith.mulf %40, %38 : vector<8x128xf32>
    %42 = arith.mulf %31, %7 : vector<8x128xf32>
    %43 = arith.addf %41, %42 : vector<8x128xf32>
    %c0_15 = arith.constant 0 : index
    %44 = arith.index_cast %11 : i32 to index
    %c0_16 = arith.constant 0 : index
    %c0_17 = arith.constant 0 : index
    %45 = vector.load %arg5[%c0_15, %44, %c0_16, %c0_17] : memref<1x8x8x128xf32, #tpu.memory_space<vmem>>, vector<1x1x8x128xf32>
    %46 = vector.shape_cast %45 : vector<1x1x8x128xf32> to vector<8x128xf32>
    %47 = vector.shape_cast %43 : vector<8x128xf32> to vector<1x1x8x128xf32>
    tpu.vector_store %arg5[%c0_15, %44, %c0_16, %c0_17], %47 {strides = array<i32>} : memref<1x8x8x128xf32, #tpu.memory_space<vmem>>, vector<1x1x8x128xf32>,
    %c1_i32 = arith.constant 1 : i32
    %c2_i32_18 = arith.constant 2 : i32
    %48 = arith.muli %c2_i32_18, %c1_i32 : i32
    %c7_i32_19 = arith.constant 7 : i32
    %49 = arith.subi %c7_i32_19, %48 : i32
    %50 = arith.muli %arg0, %49 : i32
    %51 = arith.addi %c1_i32, %50 : i32
    %c0_20 = arith.constant 0 : index
    %52 = arith.index_cast %51 : i32 to index
    %c0_21 = arith.constant 0 : index
    %c0_22 = arith.constant 0 : index
    %53 = vector.load %arg2[%c0_20, %52, %c0_21, %c0_22] : memref<1x8x8x384xf32, #tpu.memory_space<vmem>>, vector<1x1x8x384xf32>
    %54 = vector.shape_cast %53 : vector<1x1x8x384xf32> to vector<8x384xf32>
    %cst_23 = arith.constant dense<0.000000e+00> : vector<8x384xf32>
    %55 = tpu.matmul %43, %4, %cst_23 {dimension_numbers = #tpu.dot_dimension_numbers<[1], [0], [0], [1], [0, 0, 1, 1], [], []>} : vector<8x128xf32>, vector<128x384xf32>, vector<8x384xf32> -> vector<8x384xf32>
    %56 = vector.extract_strided_slice %54 {offsets = [0, 0], sizes = [8, 128], strides = [1, 1]} : vector<8x384xf32> to vector<8x128xf32>
    %57 = vector.extract_strided_slice %55 {offsets = [0, 0], sizes = [8, 128], strides = [1, 1]} : vector<8x384xf32> to vector<8x128xf32>
    %58 = arith.addf %56, %57 : vector<8x128xf32>
    %59 = arith.negf %58 : vector<8x128xf32>
    %60 = math.exp %59 : vector<8x128xf32>
    %cst_24 = arith.constant 1.000000e+00 : f32
    %61 = vector.broadcast %cst_24 : f32 to vector<8x128xf32>
    %62 = arith.addf %61, %60 : vector<8x128xf32>
    %63 = arith.divf %61, %62 : vector<8x128xf32>
    %64 = vector.extract_strided_slice %54 {offsets = [0, 128], sizes = [8, 128], strides = [1, 1]} : vector<8x384xf32> to vector<8x128xf32>
    %65 = vector.extract_strided_slice %55 {offsets = [0, 128], sizes = [8, 128], strides = [1, 1]} : vector<8x384xf32> to vector<8x128xf32>
    %66 = arith.addf %64, %65 : vector<8x128xf32>
    %67 = arith.negf %66 : vector<8x128xf32>
    %68 = math.exp %67 : vector<8x128xf32>
    %cst_25 = arith.constant 1.000000e+00 : f32
    %69 = vector.broadcast %cst_25 : f32 to vector<8x128xf32>
    %70 = arith.addf %69, %68 : vector<8x128xf32>
    %71 = arith.divf %69, %70 : vector<8x128xf32>
    %72 = vector.extract_strided_slice %54 {offsets = [0, 256], sizes = [8, 128], strides = [1, 1]} : vector<8x384xf32> to vector<8x128xf32>
    %73 = vector.extract_strided_slice %55 {offsets = [0, 256], sizes = [8, 128], strides = [1, 1]} : vector<8x384xf32> to vector<8x128xf32>
    %74 = vector.broadcast %6 : vector<1x128xf32> to vector<8x128xf32>
    %75 = arith.addf %73, %74 : vector<8x128xf32>
    %76 = arith.mulf %63, %75 : vector<8x128xf32>
    %77 = arith.addf %72, %76 : vector<8x128xf32>
    %78 = math.tanh %77 : vector<8x128xf32>
    %cst_26 = arith.constant 1.000000e+00 : f32
    %79 = vector.broadcast %cst_26 : f32 to vector<8x128xf32>
    %80 = arith.subf %79, %71 : vector<8x128xf32>
    %81 = arith.mulf %80, %78 : vector<8x128xf32>
    %82 = arith.mulf %71, %43 : vector<8x128xf32>
    %83 = arith.addf %81, %82 : vector<8x128xf32>
    %c0_27 = arith.constant 0 : index
    %84 = arith.index_cast %51 : i32 to index
    %c0_28 = arith.constant 0 : index
    %c0_29 = arith.constant 0 : index
    %85 = vector.load %arg5[%c0_27, %84, %c0_28, %c0_29] : memref<1x8x8x128xf32, #tpu.memory_space<vmem>>, vector<1x1x8x128xf32>
    %86 = vector.shape_cast %85 : vector<1x1x8x128xf32> to vector<8x128xf32>
    %87 = vector.shape_cast %83 : vector<8x128xf32> to vector<1x1x8x128xf32>
    tpu.vector_store %arg5[%c0_27, %84, %c0_28, %c0_29], %87 {strides = array<i32>} : memref<1x8x8x128xf32, #tpu.memory_space<vmem>>, vector<1x1x8x128xf32>,
    %c2_i32_30 = arith.constant 2 : i32
    %c2_i32_31 = arith.constant 2 : i32
    %88 = arith.muli %c2_i32_31, %c2_i32_30 : i32
    %c7_i32_32 = arith.constant 7 : i32
    %89 = arith.subi %c7_i32_32, %88 : i32
    %90 = arith.muli %arg0, %89 : i32
    %91 = arith.addi %c2_i32_30, %90 : i32
    %c0_33 = arith.constant 0 : index
    %92 = arith.index_cast %91 : i32 to index
    %c0_34 = arith.constant 0 : index
    %c0_35 = arith.constant 0 : index
    %93 = vector.load %arg2[%c0_33, %92, %c0_34, %c0_35] : memref<1x8x8x384xf32, #tpu.memory_space<vmem>>, vector<1x1x8x384xf32>
    %94 = vector.shape_cast %93 : vector<1x1x8x384xf32> to vector<8x384xf32>
    %cst_36 = arith.constant dense<0.000000e+00> : vector<8x384xf32>
    %95 = tpu.matmul %83, %4, %cst_36 {dimension_numbers = #tpu.dot_dimension_numbers<[1], [0], [0], [1], [0, 0, 1, 1], [], []>} : vector<8x128xf32>, vector<128x384xf32>, vector<8x384xf32> -> vector<8x384xf32>
    %96 = vector.extract_strided_slice %94 {offsets = [0, 0], sizes = [8, 128], strides = [1, 1]} : vector<8x384xf32> to vector<8x128xf32>
    %97 = vector.extract_strided_slice %95 {offsets = [0, 0], sizes = [8, 128], strides = [1, 1]} : vector<8x384xf32> to vector<8x128xf32>
    %98 = arith.addf %96, %97 : vector<8x128xf32>
    %99 = arith.negf %98 : vector<8x128xf32>
    %100 = math.exp %99 : vector<8x128xf32>
    %cst_37 = arith.constant 1.000000e+00 : f32
    %101 = vector.broadcast %cst_37 : f32 to vector<8x128xf32>
    %102 = arith.addf %101, %100 : vector<8x128xf32>
    %103 = arith.divf %101, %102 : vector<8x128xf32>
    %104 = vector.extract_strided_slice %94 {offsets = [0, 128], sizes = [8, 128], strides = [1, 1]} : vector<8x384xf32> to vector<8x128xf32>
    %105 = vector.extract_strided_slice %95 {offsets = [0, 128], sizes = [8, 128], strides = [1, 1]} : vector<8x384xf32> to vector<8x128xf32>
    %106 = arith.addf %104, %105 : vector<8x128xf32>
    %107 = arith.negf %106 : vector<8x128xf32>
    %108 = math.exp %107 : vector<8x128xf32>
    %cst_38 = arith.constant 1.000000e+00 : f32
    %109 = vector.broadcast %cst_38 : f32 to vector<8x128xf32>
    %110 = arith.addf %109, %108 : vector<8x128xf32>
    %111 = arith.divf %109, %110 : vector<8x128xf32>
    %112 = vector.extract_strided_slice %94 {offsets = [0, 256], sizes = [8, 128], strides = [1, 1]} : vector<8x384xf32> to vector<8x128xf32>
    %113 = vector.extract_strided_slice %95 {offsets = [0, 256], sizes = [8, 128], strides = [1, 1]} : vector<8x384xf32> to vector<8x128xf32>
    %114 = vector.broadcast %6 : vector<1x128xf32> to vector<8x128xf32>
    %115 = arith.addf %113, %114 : vector<8x128xf32>
    %116 = arith.mulf %103, %115 : vector<8x128xf32>
    %117 = arith.addf %112, %116 : vector<8x128xf32>
    %118 = math.tanh %117 : vector<8x128xf32>
    %cst_39 = arith.constant 1.000000e+00 : f32
    %119 = vector.broadcast %cst_39 : f32 to vector<8x128xf32>
    %120 = arith.subf %119, %111 : vector<8x128xf32>
    %121 = arith.mulf %120, %118 : vector<8x128xf32>
    %122 = arith.mulf %111, %83 : vector<8x128xf32>
    %123 = arith.addf %121, %122 : vector<8x128xf32>
    %c0_40 = arith.constant 0 : index
    %124 = arith.index_cast %91 : i32 to index
    %c0_41 = arith.constant 0 : index
    %c0_42 = arith.constant 0 : index
    %125 = vector.load %arg5[%c0_40, %124, %c0_41, %c0_42] : memref<1x8x8x128xf32, #tpu.memory_space<vmem>>, vector<1x1x8x128xf32>
    %126 = vector.shape_cast %125 : vector<1x1x8x128xf32> to vector<8x128xf32>
    %127 = vector.shape_cast %123 : vector<8x128xf32> to vector<1x1x8x128xf32>
    tpu.vector_store %arg5[%c0_40, %124, %c0_41, %c0_42], %127 {strides = array<i32>} : memref<1x8x8x128xf32, #tpu.memory_space<vmem>>, vector<1x1x8x128xf32>,
    %c3_i32 = arith.constant 3 : i32
    %c2_i32_43 = arith.constant 2 : i32
    %128 = arith.muli %c2_i32_43, %c3_i32 : i32
    %c7_i32_44 = arith.constant 7 : i32
    %129 = arith.subi %c7_i32_44, %128 : i32
    %130 = arith.muli %arg0, %129 : i32
    %131 = arith.addi %c3_i32, %130 : i32
    %c0_45 = arith.constant 0 : index
    %132 = arith.index_cast %131 : i32 to index
    %c0_46 = arith.constant 0 : index
    %c0_47 = arith.constant 0 : index
    %133 = vector.load %arg2[%c0_45, %132, %c0_46, %c0_47] : memref<1x8x8x384xf32, #tpu.memory_space<vmem>>, vector<1x1x8x384xf32>
    %134 = vector.shape_cast %133 : vector<1x1x8x384xf32> to vector<8x384xf32>
    %cst_48 = arith.constant dense<0.000000e+00> : vector<8x384xf32>
    %135 = tpu.matmul %123, %4, %cst_48 {dimension_numbers = #tpu.dot_dimension_numbers<[1], [0], [0], [1], [0, 0, 1, 1], [], []>} : vector<8x128xf32>, vector<128x384xf32>, vector<8x384xf32> -> vector<8x384xf32>
    %136 = vector.extract_strided_slice %134 {offsets = [0, 0], sizes = [8, 128], strides = [1, 1]} : vector<8x384xf32> to vector<8x128xf32>
    %137 = vector.extract_strided_slice %135 {offsets = [0, 0], sizes = [8, 128], strides = [1, 1]} : vector<8x384xf32> to vector<8x128xf32>
    %138 = arith.addf %136, %137 : vector<8x128xf32>
    %139 = arith.negf %138 : vector<8x128xf32>
    %140 = math.exp %139 : vector<8x128xf32>
    %cst_49 = arith.constant 1.000000e+00 : f32
    %141 = vector.broadcast %cst_49 : f32 to vector<8x128xf32>
    %142 = arith.addf %141, %140 : vector<8x128xf32>
    %143 = arith.divf %141, %142 : vector<8x128xf32>
    %144 = vector.extract_strided_slice %134 {offsets = [0, 128], sizes = [8, 128], strides = [1, 1]} : vector<8x384xf32> to vector<8x128xf32>
    %145 = vector.extract_strided_slice %135 {offsets = [0, 128], sizes = [8, 128], strides = [1, 1]} : vector<8x384xf32> to vector<8x128xf32>
    %146 = arith.addf %144, %145 : vector<8x128xf32>
    %147 = arith.negf %146 : vector<8x128xf32>
    %148 = math.exp %147 : vector<8x128xf32>
    %cst_50 = arith.constant 1.000000e+00 : f32
    %149 = vector.broadcast %cst_50 : f32 to vector<8x128xf32>
    %150 = arith.addf %149, %148 : vector<8x128xf32>
    %151 = arith.divf %149, %150 : vector<8x128xf32>
    %152 = vector.extract_strided_slice %134 {offsets = [0, 256], sizes = [8, 128], strides = [1, 1]} : vector<8x384xf32> to vector<8x128xf32>
    %153 = vector.extract_strided_slice %135 {offsets = [0, 256], sizes = [8, 128], strides = [1, 1]} : vector<8x384xf32> to vector<8x128xf32>
    %154 = vector.broadcast %6 : vector<1x128xf32> to vector<8x128xf32>
    %155 = arith.addf %153, %154 : vector<8x128xf32>
    %156 = arith.mulf %143, %155 : vector<8x128xf32>
    %157 = arith.addf %152, %156 : vector<8x128xf32>
    %158 = math.tanh %157 : vector<8x128xf32>
    %cst_51 = arith.constant 1.000000e+00 : f32
    %159 = vector.broadcast %cst_51 : f32 to vector<8x128xf32>
    %160 = arith.subf %159, %151 : vector<8x128xf32>
    %161 = arith.mulf %160, %158 : vector<8x128xf32>
    %162 = arith.mulf %151, %123 : vector<8x128xf32>
    %163 = arith.addf %161, %162 : vector<8x128xf32>
    %c0_52 = arith.constant 0 : index
    %164 = arith.index_cast %131 : i32 to index
    %c0_53 = arith.constant 0 : index
    %c0_54 = arith.constant 0 : index
    %165 = vector.load %arg5[%c0_52, %164, %c0_53, %c0_54] : memref<1x8x8x128xf32, #tpu.memory_space<vmem>>, vector<1x1x8x128xf32>
    %166 = vector.shape_cast %165 : vector<1x1x8x128xf32> to vector<8x128xf32>
    %167 = vector.shape_cast %163 : vector<8x128xf32> to vector<1x1x8x128xf32>
    tpu.vector_store %arg5[%c0_52, %164, %c0_53, %c0_54], %167 {strides = array<i32>} : memref<1x8x8x128xf32, #tpu.memory_space<vmem>>, vector<1x1x8x128xf32>,
    %c4_i32 = arith.constant 4 : i32
    %c2_i32_55 = arith.constant 2 : i32
    %168 = arith.muli %c2_i32_55, %c4_i32 : i32
    %c7_i32_56 = arith.constant 7 : i32
    %169 = arith.subi %c7_i32_56, %168 : i32
    %170 = arith.muli %arg0, %169 : i32
    %171 = arith.addi %c4_i32, %170 : i32
    %c0_57 = arith.constant 0 : index
    %172 = arith.index_cast %171 : i32 to index
    %c0_58 = arith.constant 0 : index
    %c0_59 = arith.constant 0 : index
    %173 = vector.load %arg2[%c0_57, %172, %c0_58, %c0_59] : memref<1x8x8x384xf32, #tpu.memory_space<vmem>>, vector<1x1x8x384xf32>
    %174 = vector.shape_cast %173 : vector<1x1x8x384xf32> to vector<8x384xf32>
    %cst_60 = arith.constant dense<0.000000e+00> : vector<8x384xf32>
    %175 = tpu.matmul %163, %4, %cst_60 {dimension_numbers = #tpu.dot_dimension_numbers<[1], [0], [0], [1], [0, 0, 1, 1], [], []>} : vector<8x128xf32>, vector<128x384xf32>, vector<8x384xf32> -> vector<8x384xf32>
    %176 = vector.extract_strided_slice %174 {offsets = [0, 0], sizes = [8, 128], strides = [1, 1]} : vector<8x384xf32> to vector<8x128xf32>
    %177 = vector.extract_strided_slice %175 {offsets = [0, 0], sizes = [8, 128], strides = [1, 1]} : vector<8x384xf32> to vector<8x128xf32>
    %178 = arith.addf %176, %177 : vector<8x128xf32>
    %179 = arith.negf %178 : vector<8x128xf32>
    %180 = math.exp %179 : vector<8x128xf32>
    %cst_61 = arith.constant 1.000000e+00 : f32
    %181 = vector.broadcast %cst_61 : f32 to vector<8x128xf32>
    %182 = arith.addf %181, %180 : vector<8x128xf32>
    %183 = arith.divf %181, %182 : vector<8x128xf32>
    %184 = vector.extract_strided_slice %174 {offsets = [0, 128], sizes = [8, 128], strides = [1, 1]} : vector<8x384xf32> to vector<8x128xf32>
    %185 = vector.extract_strided_slice %175 {offsets = [0, 128], sizes = [8, 128], strides = [1, 1]} : vector<8x384xf32> to vector<8x128xf32>
    %186 = arith.addf %184, %185 : vector<8x128xf32>
    %187 = arith.negf %186 : vector<8x128xf32>
    %188 = math.exp %187 : vector<8x128xf32>
    %cst_62 = arith.constant 1.000000e+00 : f32
    %189 = vector.broadcast %cst_62 : f32 to vector<8x128xf32>
    %190 = arith.addf %189, %188 : vector<8x128xf32>
    %191 = arith.divf %189, %190 : vector<8x128xf32>
    %192 = vector.extract_strided_slice %174 {offsets = [0, 256], sizes = [8, 128], strides = [1, 1]} : vector<8x384xf32> to vector<8x128xf32>
    %193 = vector.extract_strided_slice %175 {offsets = [0, 256], sizes = [8, 128], strides = [1, 1]} : vector<8x384xf32> to vector<8x128xf32>
    %194 = vector.broadcast %6 : vector<1x128xf32> to vector<8x128xf32>
    %195 = arith.addf %193, %194 : vector<8x128xf32>
    %196 = arith.mulf %183, %195 : vector<8x128xf32>
    %197 = arith.addf %192, %196 : vector<8x128xf32>
    %198 = math.tanh %197 : vector<8x128xf32>
    %cst_63 = arith.constant 1.000000e+00 : f32
    %199 = vector.broadcast %cst_63 : f32 to vector<8x128xf32>
    %200 = arith.subf %199, %191 : vector<8x128xf32>
    %201 = arith.mulf %200, %198 : vector<8x128xf32>
    %202 = arith.mulf %191, %163 : vector<8x128xf32>
    %203 = arith.addf %201, %202 : vector<8x128xf32>
    %c0_64 = arith.constant 0 : index
    %204 = arith.index_cast %171 : i32 to index
    %c0_65 = arith.constant 0 : index
    %c0_66 = arith.constant 0 : index
    %205 = vector.load %arg5[%c0_64, %204, %c0_65, %c0_66] : memref<1x8x8x128xf32, #tpu.memory_space<vmem>>, vector<1x1x8x128xf32>
    %206 = vector.shape_cast %205 : vector<1x1x8x128xf32> to vector<8x128xf32>
    %207 = vector.shape_cast %203 : vector<8x128xf32> to vector<1x1x8x128xf32>
    tpu.vector_store %arg5[%c0_64, %204, %c0_65, %c0_66], %207 {strides = array<i32>} : memref<1x8x8x128xf32, #tpu.memory_space<vmem>>, vector<1x1x8x128xf32>,
    %c5_i32 = arith.constant 5 : i32
    %c2_i32_67 = arith.constant 2 : i32
    %208 = arith.muli %c2_i32_67, %c5_i32 : i32
    %c7_i32_68 = arith.constant 7 : i32
    %209 = arith.subi %c7_i32_68, %208 : i32
    %210 = arith.muli %arg0, %209 : i32
    %211 = arith.addi %c5_i32, %210 : i32
    %c0_69 = arith.constant 0 : index
    %212 = arith.index_cast %211 : i32 to index
    %c0_70 = arith.constant 0 : index
    %c0_71 = arith.constant 0 : index
    %213 = vector.load %arg2[%c0_69, %212, %c0_70, %c0_71] : memref<1x8x8x384xf32, #tpu.memory_space<vmem>>, vector<1x1x8x384xf32>
    %214 = vector.shape_cast %213 : vector<1x1x8x384xf32> to vector<8x384xf32>
    %cst_72 = arith.constant dense<0.000000e+00> : vector<8x384xf32>
    %215 = tpu.matmul %203, %4, %cst_72 {dimension_numbers = #tpu.dot_dimension_numbers<[1], [0], [0], [1], [0, 0, 1, 1], [], []>} : vector<8x128xf32>, vector<128x384xf32>, vector<8x384xf32> -> vector<8x384xf32>
    %216 = vector.extract_strided_slice %214 {offsets = [0, 0], sizes = [8, 128], strides = [1, 1]} : vector<8x384xf32> to vector<8x128xf32>
    %217 = vector.extract_strided_slice %215 {offsets = [0, 0], sizes = [8, 128], strides = [1, 1]} : vector<8x384xf32> to vector<8x128xf32>
    %218 = arith.addf %216, %217 : vector<8x128xf32>
    %219 = arith.negf %218 : vector<8x128xf32>
    %220 = math.exp %219 : vector<8x128xf32>
    %cst_73 = arith.constant 1.000000e+00 : f32
    %221 = vector.broadcast %cst_73 : f32 to vector<8x128xf32>
    %222 = arith.addf %221, %220 : vector<8x128xf32>
    %223 = arith.divf %221, %222 : vector<8x128xf32>
    %224 = vector.extract_strided_slice %214 {offsets = [0, 128], sizes = [8, 128], strides = [1, 1]} : vector<8x384xf32> to vector<8x128xf32>
    %225 = vector.extract_strided_slice %215 {offsets = [0, 128], sizes = [8, 128], strides = [1, 1]} : vector<8x384xf32> to vector<8x128xf32>
    %226 = arith.addf %224, %225 : vector<8x128xf32>
    %227 = arith.negf %226 : vector<8x128xf32>
    %228 = math.exp %227 : vector<8x128xf32>
    %cst_74 = arith.constant 1.000000e+00 : f32
    %229 = vector.broadcast %cst_74 : f32 to vector<8x128xf32>
    %230 = arith.addf %229, %228 : vector<8x128xf32>
    %231 = arith.divf %229, %230 : vector<8x128xf32>
    %232 = vector.extract_strided_slice %214 {offsets = [0, 256], sizes = [8, 128], strides = [1, 1]} : vector<8x384xf32> to vector<8x128xf32>
    %233 = vector.extract_strided_slice %215 {offsets = [0, 256], sizes = [8, 128], strides = [1, 1]} : vector<8x384xf32> to vector<8x128xf32>
    %234 = vector.broadcast %6 : vector<1x128xf32> to vector<8x128xf32>
    %235 = arith.addf %233, %234 : vector<8x128xf32>
    %236 = arith.mulf %223, %235 : vector<8x128xf32>
    %237 = arith.addf %232, %236 : vector<8x128xf32>
    %238 = math.tanh %237 : vector<8x128xf32>
    %cst_75 = arith.constant 1.000000e+00 : f32
    %239 = vector.broadcast %cst_75 : f32 to vector<8x128xf32>
    %240 = arith.subf %239, %231 : vector<8x128xf32>
    %241 = arith.mulf %240, %238 : vector<8x128xf32>
    %242 = arith.mulf %231, %203 : vector<8x128xf32>
    %243 = arith.addf %241, %242 : vector<8x128xf32>
    %c0_76 = arith.constant 0 : index
    %244 = arith.index_cast %211 : i32 to index
    %c0_77 = arith.constant 0 : index
    %c0_78 = arith.constant 0 : index
    %245 = vector.load %arg5[%c0_76, %244, %c0_77, %c0_78] : memref<1x8x8x128xf32, #tpu.memory_space<vmem>>, vector<1x1x8x128xf32>
    %246 = vector.shape_cast %245 : vector<1x1x8x128xf32> to vector<8x128xf32>
    %247 = vector.shape_cast %243 : vector<8x128xf32> to vector<1x1x8x128xf32>
    tpu.vector_store %arg5[%c0_76, %244, %c0_77, %c0_78], %247 {strides = array<i32>} : memref<1x8x8x128xf32, #tpu.memory_space<vmem>>, vector<1x1x8x128xf32>,
    %c6_i32 = arith.constant 6 : i32
    %c2_i32_79 = arith.constant 2 : i32
    %248 = arith.muli %c2_i32_79, %c6_i32 : i32
    %c7_i32_80 = arith.constant 7 : i32
    %249 = arith.subi %c7_i32_80, %248 : i32
    %250 = arith.muli %arg0, %249 : i32
    %251 = arith.addi %c6_i32, %250 : i32
    %c0_81 = arith.constant 0 : index
    %252 = arith.index_cast %251 : i32 to index
    %c0_82 = arith.constant 0 : index
    %c0_83 = arith.constant 0 : index
    %253 = vector.load %arg2[%c0_81, %252, %c0_82, %c0_83] : memref<1x8x8x384xf32, #tpu.memory_space<vmem>>, vector<1x1x8x384xf32>
    %254 = vector.shape_cast %253 : vector<1x1x8x384xf32> to vector<8x384xf32>
    %cst_84 = arith.constant dense<0.000000e+00> : vector<8x384xf32>
    %255 = tpu.matmul %243, %4, %cst_84 {dimension_numbers = #tpu.dot_dimension_numbers<[1], [0], [0], [1], [0, 0, 1, 1], [], []>} : vector<8x128xf32>, vector<128x384xf32>, vector<8x384xf32> -> vector<8x384xf32>
    %256 = vector.extract_strided_slice %254 {offsets = [0, 0], sizes = [8, 128], strides = [1, 1]} : vector<8x384xf32> to vector<8x128xf32>
    %257 = vector.extract_strided_slice %255 {offsets = [0, 0], sizes = [8, 128], strides = [1, 1]} : vector<8x384xf32> to vector<8x128xf32>
    %258 = arith.addf %256, %257 : vector<8x128xf32>
    %259 = arith.negf %258 : vector<8x128xf32>
    %260 = math.exp %259 : vector<8x128xf32>
    %cst_85 = arith.constant 1.000000e+00 : f32
    %261 = vector.broadcast %cst_85 : f32 to vector<8x128xf32>
    %262 = arith.addf %261, %260 : vector<8x128xf32>
    %263 = arith.divf %261, %262 : vector<8x128xf32>
    %264 = vector.extract_strided_slice %254 {offsets = [0, 128], sizes = [8, 128], strides = [1, 1]} : vector<8x384xf32> to vector<8x128xf32>
    %265 = vector.extract_strided_slice %255 {offsets = [0, 128], sizes = [8, 128], strides = [1, 1]} : vector<8x384xf32> to vector<8x128xf32>
    %266 = arith.addf %264, %265 : vector<8x128xf32>
    %267 = arith.negf %266 : vector<8x128xf32>
    %268 = math.exp %267 : vector<8x128xf32>
    %cst_86 = arith.constant 1.000000e+00 : f32
    %269 = vector.broadcast %cst_86 : f32 to vector<8x128xf32>
    %270 = arith.addf %269, %268 : vector<8x128xf32>
    %271 = arith.divf %269, %270 : vector<8x128xf32>
    %272 = vector.extract_strided_slice %254 {offsets = [0, 256], sizes = [8, 128], strides = [1, 1]} : vector<8x384xf32> to vector<8x128xf32>
    %273 = vector.extract_strided_slice %255 {offsets = [0, 256], sizes = [8, 128], strides = [1, 1]} : vector<8x384xf32> to vector<8x128xf32>
    %274 = vector.broadcast %6 : vector<1x128xf32> to vector<8x128xf32>
    %275 = arith.addf %273, %274 : vector<8x128xf32>
    %276 = arith.mulf %263, %275 : vector<8x128xf32>
    %277 = arith.addf %272, %276 : vector<8x128xf32>
    %278 = math.tanh %277 : vector<8x128xf32>
    %cst_87 = arith.constant 1.000000e+00 : f32
    %279 = vector.broadcast %cst_87 : f32 to vector<8x128xf32>
    %280 = arith.subf %279, %271 : vector<8x128xf32>
    %281 = arith.mulf %280, %278 : vector<8x128xf32>
    %282 = arith.mulf %271, %243 : vector<8x128xf32>
    %283 = arith.addf %281, %282 : vector<8x128xf32>
    %c0_88 = arith.constant 0 : index
    %284 = arith.index_cast %251 : i32 to index
    %c0_89 = arith.constant 0 : index
    %c0_90 = arith.constant 0 : index
    %285 = vector.load %arg5[%c0_88, %284, %c0_89, %c0_90] : memref<1x8x8x128xf32, #tpu.memory_space<vmem>>, vector<1x1x8x128xf32>
    %286 = vector.shape_cast %285 : vector<1x1x8x128xf32> to vector<8x128xf32>
    %287 = vector.shape_cast %283 : vector<8x128xf32> to vector<1x1x8x128xf32>
    tpu.vector_store %arg5[%c0_88, %284, %c0_89, %c0_90], %287 {strides = array<i32>} : memref<1x8x8x128xf32, #tpu.memory_space<vmem>>, vector<1x1x8x128xf32>,
    %c7_i32_91 = arith.constant 7 : i32
    %c2_i32_92 = arith.constant 2 : i32
    %288 = arith.muli %c2_i32_92, %c7_i32_91 : i32
    %c7_i32_93 = arith.constant 7 : i32
    %289 = arith.subi %c7_i32_93, %288 : i32
    %290 = arith.muli %arg0, %289 : i32
    %291 = arith.addi %c7_i32_91, %290 : i32
    %c0_94 = arith.constant 0 : index
    %292 = arith.index_cast %291 : i32 to index
    %c0_95 = arith.constant 0 : index
    %c0_96 = arith.constant 0 : index
    %293 = vector.load %arg2[%c0_94, %292, %c0_95, %c0_96] : memref<1x8x8x384xf32, #tpu.memory_space<vmem>>, vector<1x1x8x384xf32>
    %294 = vector.shape_cast %293 : vector<1x1x8x384xf32> to vector<8x384xf32>
    %cst_97 = arith.constant dense<0.000000e+00> : vector<8x384xf32>
    %295 = tpu.matmul %283, %4, %cst_97 {dimension_numbers = #tpu.dot_dimension_numbers<[1], [0], [0], [1], [0, 0, 1, 1], [], []>} : vector<8x128xf32>, vector<128x384xf32>, vector<8x384xf32> -> vector<8x384xf32>
    %296 = vector.extract_strided_slice %294 {offsets = [0, 0], sizes = [8, 128], strides = [1, 1]} : vector<8x384xf32> to vector<8x128xf32>
    %297 = vector.extract_strided_slice %295 {offsets = [0, 0], sizes = [8, 128], strides = [1, 1]} : vector<8x384xf32> to vector<8x128xf32>
    %298 = arith.addf %296, %297 : vector<8x128xf32>
    %299 = arith.negf %298 : vector<8x128xf32>
    %300 = math.exp %299 : vector<8x128xf32>
    %cst_98 = arith.constant 1.000000e+00 : f32
    %301 = vector.broadcast %cst_98 : f32 to vector<8x128xf32>
    %302 = arith.addf %301, %300 : vector<8x128xf32>
    %303 = arith.divf %301, %302 : vector<8x128xf32>
    %304 = vector.extract_strided_slice %294 {offsets = [0, 128], sizes = [8, 128], strides = [1, 1]} : vector<8x384xf32> to vector<8x128xf32>
    %305 = vector.extract_strided_slice %295 {offsets = [0, 128], sizes = [8, 128], strides = [1, 1]} : vector<8x384xf32> to vector<8x128xf32>
    %306 = arith.addf %304, %305 : vector<8x128xf32>
    %307 = arith.negf %306 : vector<8x128xf32>
    %308 = math.exp %307 : vector<8x128xf32>
    %cst_99 = arith.constant 1.000000e+00 : f32
    %309 = vector.broadcast %cst_99 : f32 to vector<8x128xf32>
    %310 = arith.addf %309, %308 : vector<8x128xf32>
    %311 = arith.divf %309, %310 : vector<8x128xf32>
    %312 = vector.extract_strided_slice %294 {offsets = [0, 256], sizes = [8, 128], strides = [1, 1]} : vector<8x384xf32> to vector<8x128xf32>
    %313 = vector.extract_strided_slice %295 {offsets = [0, 256], sizes = [8, 128], strides = [1, 1]} : vector<8x384xf32> to vector<8x128xf32>
    %314 = vector.broadcast %6 : vector<1x128xf32> to vector<8x128xf32>
    %315 = arith.addf %313, %314 : vector<8x128xf32>
    %316 = arith.mulf %303, %315 : vector<8x128xf32>
    %317 = arith.addf %312, %316 : vector<8x128xf32>
    %318 = math.tanh %317 : vector<8x128xf32>
    %cst_100 = arith.constant 1.000000e+00 : f32
    %319 = vector.broadcast %cst_100 : f32 to vector<8x128xf32>
    %320 = arith.subf %319, %311 : vector<8x128xf32>
    %321 = arith.mulf %320, %318 : vector<8x128xf32>
    %322 = arith.mulf %311, %283 : vector<8x128xf32>
    %323 = arith.addf %321, %322 : vector<8x128xf32>
    %c0_101 = arith.constant 0 : index
    %324 = arith.index_cast %291 : i32 to index
    %c0_102 = arith.constant 0 : index
    %c0_103 = arith.constant 0 : index
    %325 = vector.load %arg5[%c0_101, %324, %c0_102, %c0_103] : memref<1x8x8x128xf32, #tpu.memory_space<vmem>>, vector<1x1x8x128xf32>
    %326 = vector.shape_cast %325 : vector<1x1x8x128xf32> to vector<8x128xf32>
    %327 = vector.shape_cast %323 : vector<8x128xf32> to vector<1x1x8x128xf32>
    tpu.vector_store %arg5[%c0_101, %324, %c0_102, %c0_103], %327 {strides = array<i32>} : memref<1x8x8x128xf32, #tpu.memory_space<vmem>>, vector<1x1x8x128xf32>,
    %c8_i32 = arith.constant 8 : i32
    %c0_104 = arith.constant 0 : index
    %c0_105 = arith.constant 0 : index
    %328 = vector.load %arg6[%c0_104, %c0_105] : memref<8x128xf32, #tpu.memory_space<vmem>>, vector<8x128xf32>
    tpu.vector_store %arg6[%c0_104, %c0_105], %323 {strides = array<i32>} : memref<8x128xf32, #tpu.memory_space<vmem>>, vector<8x128xf32>,
    return
  }
  func.func @transform_0(%arg0: i32, %arg1: i32) -> (i32, i32, i32, i32) {
    %c2_i32 = arith.constant 2 : i32
    %0 = arith.muli %c2_i32, %arg1 : i32
    %c1_i32 = arith.constant 1 : i32
    %1 = arith.subi %c1_i32, %0 : i32
    %2 = arith.muli %arg0, %1 : i32
    %3 = arith.addi %arg1, %2 : i32
    %c0_i32 = arith.constant 0 : i32
    %c0_i32_0 = arith.constant 0 : i32
    %c0_i32_1 = arith.constant 0 : i32
    return %arg0, %3, %c0_i32, %c0_i32_0 : i32, i32, i32, i32
  }
  func.func @transform_1(%arg0: i32, %arg1: i32) -> (i32, i32, i32) {
    %c0_i32 = arith.constant 0 : i32
    %c0_i32_0 = arith.constant 0 : i32
    %c0_i32_1 = arith.constant 0 : i32
    return %arg0, %c0_i32, %c0_i32_0 : i32, i32, i32
  }
  func.func @transform_2(%arg0: i32, %arg1: i32) -> (i32, i32, i32) {
    %c0_i32 = arith.constant 0 : i32
    %c0_i32_0 = arith.constant 0 : i32
    %c0_i32_1 = arith.constant 0 : i32
    return %arg0, %c0_i32, %c0_i32_0 : i32, i32, i32
  }
  func.func @transform_3(%arg0: i32, %arg1: i32) -> (i32, i32, i32, i32) {
    %c2_i32 = arith.constant 2 : i32
    %0 = arith.muli %c2_i32, %arg1 : i32
    %c1_i32 = arith.constant 1 : i32
    %1 = arith.subi %c1_i32, %0 : i32
    %2 = arith.muli %arg0, %1 : i32
    %3 = arith.addi %arg1, %2 : i32
    %c0_i32 = arith.constant 0 : i32
    %c0_i32_0 = arith.constant 0 : i32
    %c0_i32_1 = arith.constant 0 : i32
    return %arg0, %3, %c0_i32, %c0_i32_0 : i32, i32, i32, i32
  }
}

module attributes {stable_mosaic.version = 11 : i64} {
  func.func @_atten_fc_kernel(%arg0: memref<2x16x8x128xf32, #tpu.memory_space<vmem>>, %arg1: memref<128x64xf32, #tpu.memory_space<vmem>>, %arg2: memref<128x64xf32, #tpu.memory_space<vmem>>, %arg3: memref<1x1x64xf32, #tpu.memory_space<vmem>>, %arg4: memref<128x4xf32, #tpu.memory_space<vmem>>, %arg5: memref<128x4xf32, #tpu.memory_space<vmem>>, %arg6: memref<1x4xf32, #tpu.memory_space<vmem>>, %arg7: memref<8x4xf32, #tpu.memory_space<vmem>>) attributes {dimension_semantics = [], scalar_prefetch = 0 : i64, scratch_operands = 0 : i64, tpu.core_type = #tpu.core_type<tc>} {
    %c0 = arith.constant 0 : index
    %c0_0 = arith.constant 0 : index
    %c0_1 = arith.constant 0 : index
    %c0_2 = arith.constant 0 : index
    %0 = vector.load %arg0[%c0, %c0_0, %c0_1, %c0_2] : memref<2x16x8x128xf32, #tpu.memory_space<vmem>>, vector<1x16x8x128xf32>
    %1 = vector.shape_cast %0 : vector<1x16x8x128xf32> to vector<16x8x128xf32>
    %c1 = arith.constant 1 : index
    %c0_3 = arith.constant 0 : index
    %c0_4 = arith.constant 0 : index
    %c0_5 = arith.constant 0 : index
    %2 = vector.load %arg0[%c1, %c0_3, %c0_4, %c0_5] : memref<2x16x8x128xf32, #tpu.memory_space<vmem>>, vector<1x16x8x128xf32>
    %3 = vector.shape_cast %2 : vector<1x16x8x128xf32> to vector<16x8x128xf32>
    %4 = vector.shape_cast %1 : vector<16x8x128xf32> to vector<128x128xf32>
    %5 = vector.shape_cast %3 : vector<16x8x128xf32> to vector<128x128xf32>
    %c0_6 = arith.constant 0 : index
    %c0_7 = arith.constant 0 : index
    %6 = vector.load %arg1[%c0_6, %c0_7] : memref<128x64xf32, #tpu.memory_space<vmem>>, vector<128x64xf32>
    %cst = arith.constant dense<0.000000e+00> : vector<128x64xf32>
    %7 = tpu.matmul %4, %6, %cst {dimension_numbers = #tpu.dot_dimension_numbers<[1], [0], [0], [1], [0, 0, 1, 1], [], []>} : vector<128x128xf32>, vector<128x64xf32>, vector<128x64xf32> -> vector<128x64xf32>
    %c0_8 = arith.constant 0 : index
    %c0_9 = arith.constant 0 : index
    %8 = vector.load %arg2[%c0_8, %c0_9] : memref<128x64xf32, #tpu.memory_space<vmem>>, vector<128x64xf32>
    %cst_10 = arith.constant dense<0.000000e+00> : vector<128x64xf32>
    %9 = tpu.matmul %5, %8, %cst_10 {dimension_numbers = #tpu.dot_dimension_numbers<[1], [0], [0], [1], [0, 0, 1, 1], [], []>} : vector<128x128xf32>, vector<128x64xf32>, vector<128x64xf32> -> vector<128x64xf32>
    %10 = arith.addf %7, %9 : vector<128x64xf32>
    %11 = math.tanh %10 : vector<128x64xf32>
    %12 = vector.shape_cast %11 : vector<128x64xf32> to vector<16x8x64xf32>
    %c0_11 = arith.constant 0 : index
    %c0_12 = arith.constant 0 : index
    %c0_13 = arith.constant 0 : index
    %13 = vector.load %arg3[%c0_11, %c0_12, %c0_13] : memref<1x1x64xf32, #tpu.memory_space<vmem>>, vector<1x1x64xf32>
    %14 = vector.broadcast %13 : vector<1x1x64xf32> to vector<16x8x64xf32>
    %15 = arith.mulf %12, %14 : vector<16x8x64xf32>
    %cst_14 = arith.constant dense<0.000000e+00> : vector<16x8xf32>
    %16 = vector.multi_reduction <add>, %15, %cst_14 [2] : vector<16x8x64xf32> to vector<16x8xf32>
    %17 = vector.shape_cast %16 : vector<16x8xf32> to vector<16x8x1xf32>
    %cst_15 = arith.constant dense<0xFF800000> : vector<8x1xf32>
    %18 = vector.multi_reduction <maximumf>, %17, %cst_15 [0] : vector<16x8x1xf32> to vector<8x1xf32>
    %19 = vector.shape_cast %18 : vector<8x1xf32> to vector<1x8x1xf32>
    %20 = vector.broadcast %19 : vector<1x8x1xf32> to vector<16x8x1xf32>
    %21 = arith.subf %17, %20 : vector<16x8x1xf32>
    %22 = math.exp %21 : vector<16x8x1xf32>
    %cst_16 = arith.constant dense<0.000000e+00> : vector<8x1xf32>
    %23 = vector.multi_reduction <add>, %22, %cst_16 [0] : vector<16x8x1xf32> to vector<8x1xf32>
    %24 = vector.shape_cast %23 : vector<8x1xf32> to vector<1x8x1xf32>
    %25 = vector.broadcast %24 : vector<1x8x1xf32> to vector<16x8x1xf32>
    %26 = arith.divf %22, %25 : vector<16x8x1xf32>
    %27 = vector.broadcast %26 : vector<16x8x1xf32> to vector<16x8x128xf32>
    %28 = arith.mulf %1, %27 : vector<16x8x128xf32>
    %cst_17 = arith.constant dense<0.000000e+00> : vector<8x128xf32>
    %29 = vector.multi_reduction <add>, %28, %cst_17 [0] : vector<16x8x128xf32> to vector<8x128xf32>
    %30 = vector.broadcast %26 : vector<16x8x1xf32> to vector<16x8x128xf32>
    %31 = arith.mulf %3, %30 : vector<16x8x128xf32>
    %cst_18 = arith.constant dense<0.000000e+00> : vector<8x128xf32>
    %32 = vector.multi_reduction <add>, %31, %cst_18 [0] : vector<16x8x128xf32> to vector<8x128xf32>
    %c0_19 = arith.constant 0 : index
    %c0_20 = arith.constant 0 : index
    %33 = vector.load %arg4[%c0_19, %c0_20] : memref<128x4xf32, #tpu.memory_space<vmem>>, vector<128x4xf32>
    %cst_21 = arith.constant dense<0.000000e+00> : vector<8x4xf32>
    %34 = tpu.matmul %29, %33, %cst_21 {dimension_numbers = #tpu.dot_dimension_numbers<[1], [0], [0], [1], [0, 0, 1, 1], [], []>} : vector<8x128xf32>, vector<128x4xf32>, vector<8x4xf32> -> vector<8x4xf32>
    %c0_22 = arith.constant 0 : index
    %c0_23 = arith.constant 0 : index
    %35 = vector.load %arg5[%c0_22, %c0_23] : memref<128x4xf32, #tpu.memory_space<vmem>>, vector<128x4xf32>
    %cst_24 = arith.constant dense<0.000000e+00> : vector<8x4xf32>
    %36 = tpu.matmul %32, %35, %cst_24 {dimension_numbers = #tpu.dot_dimension_numbers<[1], [0], [0], [1], [0, 0, 1, 1], [], []>} : vector<8x128xf32>, vector<128x4xf32>, vector<8x4xf32> -> vector<8x4xf32>
    %37 = arith.addf %34, %36 : vector<8x4xf32>
    %c0_25 = arith.constant 0 : index
    %c0_26 = arith.constant 0 : index
    %38 = vector.load %arg6[%c0_25, %c0_26] : memref<1x4xf32, #tpu.memory_space<vmem>>, vector<1x4xf32>
    %39 = vector.broadcast %38 : vector<1x4xf32> to vector<8x4xf32>
    %40 = arith.addf %37, %39 : vector<8x4xf32>
    %41 = arith.negf %40 : vector<8x4xf32>
    %42 = math.exp %41 : vector<8x4xf32>
    %cst_27 = arith.constant 1.000000e+00 : f32
    %43 = vector.broadcast %cst_27 : f32 to vector<8x4xf32>
    %44 = arith.addf %43, %42 : vector<8x4xf32>
    %45 = arith.divf %43, %44 : vector<8x4xf32>
    %c0_28 = arith.constant 0 : index
    %c0_29 = arith.constant 0 : index
    %46 = vector.load %arg7[%c0_28, %c0_29] : memref<8x4xf32, #tpu.memory_space<vmem>>, vector<8x4xf32>
    tpu.vector_store %arg7[%c0_28, %c0_29], %45 {strides = array<i32>} : memref<8x4xf32, #tpu.memory_space<vmem>>, vector<8x4xf32>,
    return
  }
}

</mosaic_0001>

<bundles_post_ra>
// kernel: bigru_atten2_forward.3
= control target key start
LH: loop header
LB: loop body
LE: loop exit
PB: predicated region body
PF: predicated region fallthrough
CT: control target
= control target key end

     0   :  { %vm420_vm0 = vcmask 523264   ;;  %vm1319_vm1 = vmmov 0   ;;  %vm812_vm2 = vcmask 31744   ;;  %s1872_s2 = inlined_call_operand.vmem [shape: f32[128,64], index: 2, kind: input, shape index: {}]   ;;  %s1873_s0 = inlined_call_operand.vmem [shape: f32[2,16,8,128], index: 0, kind: input, shape index: {}]   ;;  %s1874_s1 = inlined_call_operand.vmem [shape: f32[128,64], index: 1, kind: input, shape index: {}]   ;;  %s1875_s3 = inlined_call_operand.vmem [shape: f32[1,1,64], index: 3, kind: input, shape index: {}]   ;;  %s1876_s5 = inlined_call_operand.vmem [shape: f32[128,4], index: 5, kind: input, shape index: {}]   ;;  %s1877_s4 = inlined_call_operand.vmem [shape: f32[128,4], index: 4, kind: input, shape index: {}]   ;;  %s1878_s6 = inlined_call_operand.vmem [shape: f32[1,4], index: 6, kind: input, shape index: {}]   ;;  %s1879_s7 = inlined_call_operand.vmem [shape: f32[8,4], index: 7, kind: output, shape index: {}]  }
   0x1   :  { %v75_v0 = vld [vmem:[%s1872_s2] sm:$0xff]  ;;  %v76_v1 = vld [vmem:[%s1872_s2 + $0x8] sm:$0xff]  ;;  %v77_v2 = vld [vmem:[%s1872_s2 + $0x10] sm:$0xff] }
   0x2   :  { %v1117_v3 = vpack.c.bf16 %v76_v1, %v75_v0  ;;  %v78_v4 = vld [vmem:[%s1872_s2 + $0x18] sm:$0xff]  ;;  %v79_v6 = vld [vmem:[%s1872_s2 + $0x20] sm:$0xff]  ;;  %v80_v7 = vld [vmem:[%s1872_s2 + $0x28] sm:$0xff] }
   0x3   :  { %v1121_v5 = vpack.c.bf16 %v78_v4, %v77_v2  ;;  %v1125_v8 = vpack.c.bf16 %v80_v7, %v79_v6  ;;  %v1382_v9 = vld [vmem:[%s1873_s0 + $0x80] sm:$0xff]  ;;  %v81_v10 = vld [vmem:[%s1872_s2 + $0x30] sm:$0xff]  ;;  %v82_v11 = vld [vmem:[%s1872_s2 + $0x38] sm:$0xff] }
   0x4   :  { %1118 = vmatprep.subr.bf16.mxu0 %v1117_v3  ;;  %967 = vmatprep.mubr.f32.mxu0 %v1382_v9  ;;  %v1129_v12 = vpack.c.bf16 %v82_v11, %v81_v10  ;;  %v83_v13 = vld [vmem:[%s1872_s2 + $0x40] sm:$0xff]  ;;  %v84_v14 = vld [vmem:[%s1872_s2 + $0x48] sm:$0xff]  ;;  %v85_v16 = vld [vmem:[%s1872_s2 + $0x50] sm:$0xff] }
   0x5   :  { %1120 = vmatpush3.bf16.msra.mxu0 %v1117_v3  ;;  %v1133_v15 = vpack.c.bf16 %v84_v14, %v83_v13  ;;  %v86_v17 = vld [vmem:[%s1872_s2 + $0x58] sm:$0xff]  ;;  %v87_v19 = vld [vmem:[%s1872_s2 + $0x60] sm:$0xff]  ;;  %v88_v20 = vld [vmem:[%s1872_s2 + $0x68] sm:$0xff] }
   0x6   :  { %1122 = vmatprep.subr.bf16.mxu0 %v1121_v5  ;;  %v1137_v18 = vpack.c.bf16 %v86_v17, %v85_v16  ;;  %v1141_v21 = vpack.c.bf16 %v88_v20, %v87_v19  ;;  %v89_v22 = vld [vmem:[%s1872_s2 + $0x70] sm:$0xff]  ;;  %v90_v23 = vld [vmem:[%s1872_s2 + $0x78] sm:$0xff]  ;;  %v59_v25 = vld [vmem:[%s1874_s1] sm:$0xff] }
   0x7   :  { %v1145_v24 = vpack.c.bf16 %v90_v23, %v89_v22  ;;  %v60_v26 = vld [vmem:[%s1874_s1 + $0x8] sm:$0xff]  ;;  %v61_v28 = vld [vmem:[%s1874_s1 + $0x10] sm:$0xff]  ;;  %v62_v29 = vld [vmem:[%s1874_s1 + $0x18] sm:$0xff] }
   0x8   :  { %v1149_v27 = vpack.c.bf16 %v60_v26, %v59_v25  ;;  %v1430_v30 = vld [vmem:[%s1873_s0 + $0x88] sm:$0xff]  ;;  %v1435_v31 = vld [vmem:[%s1873_s0 + $0x90] sm:$0xff]  ;;  %v1153_v32 = vpack.c.bf16 %v62_v29, %v61_v28  ;;  %v63_v33 = vld [vmem:[%s1874_s1 + $0x20] sm:$0xff] }
   0x9   :  { %1124 = vmatpush3.bf16.msra.mxu0 %v1121_v5  ;;  %v64_v34 = vld [vmem:[%s1874_s1 + $0x28] sm:$0xff]  ;;  %v1448_v35 = vld [vmem:[%s1873_s0 + $0x98] sm:$0xff]  ;;  %v1453_v36 = vld [vmem:[%s1873_s0 + $0xa0] sm:$0xff] }
   0xa   :  { %1126 = vmatprep.subr.bf16.mxu0 %v1125_v8  ;;  %v1157_v37 = vpack.c.bf16 %v64_v34, %v63_v33  ;;  %v65_v38 = vld [vmem:[%s1874_s1 + $0x30] sm:$0xff]  ;;  %v66_v39 = vld [vmem:[%s1874_s1 + $0x38] sm:$0xff]  ;;  %v1466_v40 = vld [vmem:[%s1873_s0 + $0xa8] sm:$0xff] }
   0xb   :  { %v1471_v41 = vld [vmem:[%s1873_s0 + $0xb0] sm:$0xff]  ;;  %v1161_v42 = vpack.c.bf16 %v66_v39, %v65_v38  ;;  %v67_v43 = vld [vmem:[%s1874_s1 + $0x40] sm:$0xff]  ;;  %v68_v44 = vld [vmem:[%s1874_s1 + $0x48] sm:$0xff] }
   0xc   :  { %v1484_v45 = vld [vmem:[%s1873_s0 + $0xb8] sm:$0xff]  ;;  %v1489_v46 = vld [vmem:[%s1873_s0 + $0xc0] sm:$0xff]  ;;  %v1165_v47 = vpack.c.bf16 %v68_v44, %v67_v43  ;;  %v69_v48 = vld [vmem:[%s1874_s1 + $0x50] sm:$0xff] }
   0xd   :  { %1128 = vmatpush3.bf16.msra.mxu0 %v1125_v8  ;;  %v70_v49 = vld [vmem:[%s1874_s1 + $0x58] sm:$0xff]  ;;  %v1502_v50 = vld [vmem:[%s1873_s0 + $0xc8] sm:$0xff]  ;;  %v1507_v51 = vld [vmem:[%s1873_s0 + $0xd0] sm:$0xff] }
   0xe   :  { %1130 = vmatprep.subr.bf16.mxu0 %v1129_v12  ;;  %v1169_v52 = vpack.c.bf16 %v70_v49, %v69_v48  ;;  %v71_v53 = vld [vmem:[%s1874_s1 + $0x60] sm:$0xff]  ;;  %v72_v54 = vld [vmem:[%s1874_s1 + $0x68] sm:$0xff]  ;;  %v1520_v55 = vld [vmem:[%s1873_s0 + $0xd8] sm:$0xff] }
   0xf   :  { %v1525_v56 = vld [vmem:[%s1873_s0 + $0xe0] sm:$0xff]  ;;  %v1173_v57 = vpack.c.bf16 %v72_v54, %v71_v53  ;;  %v73_v58 = vld [vmem:[%s1874_s1 + $0x70] sm:$0xff]  ;;  %v74_v59 = vld [vmem:[%s1874_s1 + $0x78] sm:$0xff] }
  0x10   :  { %v1538_v60 = vld [vmem:[%s1873_s0 + $0xe8] sm:$0xff]  ;;  %v1543_v61 = vld [vmem:[%s1873_s0 + $0xf0] sm:$0xff]  ;;  %v1177_v62 = vpack.c.bf16 %v74_v59, %v73_v58  ;;  %v1550_v63 = vld [vmem:[%s1873_s0 + $0xf8] sm:$0xff] }
  0x11   :  { %1132 = vmatpush3.bf16.msra.mxu0 %v1129_v12  ;;  %v1555_v0 = vld [vmem:[%s1873_s0] sm:$0xff]  ;;  %v1562_v1 = vld [vmem:[%s1873_s0 + $0x8] sm:$0xff]  ;;  %v1567_v2 = vld [vmem:[%s1873_s0 + $0x10] sm:$0xff] }
  0x12   :  { %1134 = vmatprep.subr.bf16.mxu0 %v1133_v15  ;;  %v1574_v3 = vld [vmem:[%s1873_s0 + $0x18] sm:$0xff]  ;;  %v1579_v4 = vld [vmem:[%s1873_s0 + $0x20] sm:$0xff]  ;;  %v1586_v5 = vld [vmem:[%s1873_s0 + $0x28] sm:$0xff] }
  0x13   :  { %v1591_v6 = vld [vmem:[%s1873_s0 + $0x30] sm:$0xff]  ;;  %v1598_v7 = vld [vmem:[%s1873_s0 + $0x38] sm:$0xff]  ;;  %v1603_v8 = vld [vmem:[%s1873_s0 + $0x40] sm:$0xff] }
  0x14   :  { %v1610_v10 = vld [vmem:[%s1873_s0 + $0x48] sm:$0xff]  ;;  %v1615_v11 = vld [vmem:[%s1873_s0 + $0x50] sm:$0xff]  ;;  %v1622_v12 = vld [vmem:[%s1873_s0 + $0x58] sm:$0xff] }
  0x15   :  { %1136 = vmatpush3.bf16.msra.mxu0 %v1133_v15  ;;  %1888 = vst [vmem:[#allocation2_spill] sm:$0xff] %v1622_v12  ;;  %v1627_v13 = vld [vmem:[%s1873_s0 + $0x60] sm:$0xff]  ;;  %v1634_v14 = vld [vmem:[%s1873_s0 + $0x68] sm:$0xff]  ;;  %v1639_v15 = vld [vmem:[%s1873_s0 + $0x70] sm:$0xff] }
  0x16   :  { %1138 = vmatprep.subr.bf16.mxu0 %v1137_v18  ;;  %1889 = vst [vmem:[#allocation3_spill] sm:$0xff] %v1627_v13  ;;  %1890 = vst [vmem:[#allocation4_spill] sm:$0xff] %v1634_v14  ;;  %v1646_v16 = vld [vmem:[%s1873_s0 + $0x78] sm:$0xff]  ;;  %v1652_v23 = vld [vmem:[%s1875_s3] ss:$0 sm:$0xff] }
  0x17   :  { %1891 = vst [vmem:[#allocation5_spill] sm:$0xff] %v1639_v15  ;;  %1892 = vst [vmem:[#allocation6_spill] sm:$0xff] %v1646_v16 }
  0x19   :  { %1140 = vmatpush3.bf16.msra.mxu0 %v1137_v18 }
  0x1a   :  { %1142 = vmatprep.subr.bf16.mxu0 %v1141_v21 }
  0x1d   :  { %1144 = vmatpush3.bf16.msra.mxu0 %v1141_v21 }
  0x1e   :  { %1146 = vmatprep.subr.bf16.mxu0 %v1145_v24 }
  0x21   :  { %1148 = vmatpush3.bf16.msra.mxu0 %v1145_v24 }
  0x22   :  { %1150 = vmatprep.subr.bf16.mxu0 %v1149_v27 }
  0x24   :  { %968 = vmatmul.mubr.f32.vlgmr.msra.gmra.mrb[0].mxu0 %v1430_v30 }
  0x25   :  { %1152 = vmatpush3.bf16.msra.mxu0 %v1149_v27  ;;  %970 = vmatprep.mubr.f32.mxu0 %v1435_v31 }
  0x26   :  { %1154 = vmatprep.subr.bf16.mxu0 %v1153_v32 }
  0x28   :  { %971 = vmatmul.mubr.f32.gmra.mrb[2].mxu0 %v1448_v35 }
  0x29   :  { %1156 = vmatpush3.bf16.msra.mxu0 %v1153_v32  ;;  %973 = vmatprep.mubr.f32.mxu0 %v1453_v36 }
  0x2a   :  { %1158 = vmatprep.subr.bf16.mxu0 %v1157_v37 }
  0x2c   :  { %974 = vmatmul.mubr.f32.gmra.mrb[4].mxu0 %v1466_v40 }
  0x2d   :  { %1160 = vmatpush3.bf16.msra.mxu0 %v1157_v37  ;;  %976 = vmatprep.mubr.f32.mxu0 %v1471_v41 }
  0x2e   :  { %1162 = vmatprep.subr.bf16.mxu0 %v1161_v42 }
  0x30   :  { %977 = vmatmul.mubr.f32.gmra.mrb[6].mxu0 %v1484_v45 }
  0x31   :  { %1164 = vmatpush3.bf16.msra.mxu0 %v1161_v42  ;;  %979 = vmatprep.mubr.f32.mxu0 %v1489_v46 }
  0x32   :  { %1166 = vmatprep.subr.bf16.mxu0 %v1165_v47 }
  0x34   :  { %980 = vmatmul.mubr.f32.gmra.mrb[8].mxu0 %v1502_v50 }
  0x35   :  { %1168 = vmatpush3.bf16.msra.mxu0 %v1165_v47  ;;  %982 = vmatprep.mubr.f32.mxu0 %v1507_v51 }
  0x36   :  { %1170 = vmatprep.subr.bf16.mxu0 %v1169_v52 }
  0x38   :  { %983 = vmatmul.mubr.f32.gmra.mrb[10].mxu0 %v1520_v55 }
  0x39   :  { %1172 = vmatpush3.bf16.msra.mxu0 %v1169_v52  ;;  %985 = vmatprep.mubr.f32.mxu0 %v1525_v56 }
  0x3a   :  { %1174 = vmatprep.subr.bf16.mxu0 %v1173_v57 }
  0x3c   :  { %986 = vmatmul.mubr.f32.gmra.mrb[12].mxu0 %v1538_v60 }
  0x3d   :  { %1176 = vmatpush3.bf16.msra.mxu0 %v1173_v57  ;;  %988 = vmatprep.mubr.f32.mxu0 %v1543_v61 }
  0x3e   :  { %1178 = vmatprep.subr.bf16.mxu0 %v1177_v62 }
  0x40   :  { %989 = vmatmul.mubr.f32.gmra.mrb[14].mxu0 %v1550_v63 }
  0x41   :  { %1180 = vmatpush3.bf16.msra.mxu0 %v1177_v62  ;;  %1023 = vmatprep.mubr.f32.mxu0 %v1555_v0 }
  0x44   :  { %1024 = vmatmul.mubr.f32.vlgmr.msra.gmra.mrb[0].mxu0 %v1562_v1 }
  0x45   :  { %1026 = vmatprep.mubr.f32.mxu0 %v1567_v2 }
  0x48   :  { %1027 = vmatmul.mubr.f32.gmra.mrb[2].mxu0 %v1574_v3 }
  0x49   :  { %1029 = vmatprep.mubr.f32.mxu0 %v1579_v4 }
  0x4c   :  { %1030 = vmatmul.mubr.f32.gmra.mrb[4].mxu0 %v1586_v5 }
  0x4d   :  { %1032 = vmatprep.mubr.f32.mxu0 %v1591_v6 }
  0x50   :  { %1033 = vmatmul.mubr.f32.gmra.mrb[6].mxu0 %v1598_v7 }
  0x51   :  { %1035 = vmatprep.mubr.f32.mxu0 %v1603_v8 }
  0x54   :  { %1036 = vmatmul.mubr.f32.gmra.mrb[8].mxu0 %v1610_v10 }
  0x55   :  { %1038 = vmatprep.mubr.f32.mxu0 %v1615_v11 }
  0x58   :  { %1039 = vmatmul.mubr.f32.gmra.mrb[10].mxu0 %v1622_v12 }
  0x59   :  { %1041 = vmatprep.mubr.f32.mxu0 %v1627_v13 }
  0x5c   :  { %1042 = vmatmul.mubr.f32.gmra.mrb[12].mxu0 %v1634_v14 }
  0x5d   :  { %1044 = vmatprep.mubr.f32.mxu0 %v1639_v15 }
  0x60   :  { %1045 = vmatmul.mubr.f32.gmra.mrb[14].mxu0 %v1646_v16 }
 0x117   :  { %v1025_v17 = vpop.f32.mrb[0].mxu0 }
 0x118   :  { %1248 = vtanh.f32 %v1025_v17  ;;  %v302_v18 = vpop.f32.mrb[1].mxu0 }
 0x119   :  { %1250 = vtanh.f32 %v302_v18 }
 0x11b   :  { %v1028_v19 = vpop.f32.mrb[2].mxu0 }
 0x11c   :  { %1252 = vtanh.f32 %v1028_v19  ;;  %v312_v20 = vpop.f32.mrb[3].mxu0 }
 0x11d   :  { %1254 = vtanh.f32 %v312_v20 }
 0x11f   :  { %v1031_v21 = vpop.f32.mrb[4].mxu0 }
 0x120   :  { %1256 = vtanh.f32 %v1031_v21  ;;  %v322_v22 = vpop.f32.mrb[5].mxu0 }
 0x121   :  { %1258 = vtanh.f32 %v322_v22 }
 0x122   :  { %v1249_v24 = vpop.eup %1248 }
 0x123   :  { %v1251_v25 = vpop.eup %1250  ;;  %v1034_v26 = vpop.f32.mrb[6].mxu0  ;;  %v405_v27 = vmul.f32 %v1249_v24, %v1652_v23 }
 0x124   :  { %1260 = vtanh.f32 %v1034_v26  ;;  %v332_v28 = vpop.f32.mrb[7].mxu0  ;;  %v404_v32 = vmul.f32 %v1251_v25, %v1652_v23 }
 0x125   :  { %1262 = vtanh.f32 %v332_v28  ;;  %v424_v29 = vsel %vm420_vm0, %v405_v27, 0.0 }
 0x126   :  { %v1253_v33 = vpop.eup %1252  ;;  %425 = vadd.xlane.f32.xlu0 %v424_v29  ;;  %v421_v42 = vsel %vm420_vm0, %v404_v32, 0.0 }
 0x127   :  { %v1255_v34 = vpop.eup %1254  ;;  %v1037_v37 = vpop.f32.mrb[8].mxu0  ;;  %v407_v38 = vmul.f32 %v1253_v33, %v1652_v23 }
 0x128   :  { %1264 = vtanh.f32 %v1037_v37  ;;  %v342_v39 = vpop.f32.mrb[9].mxu0  ;;  %v406_v44 = vmul.f32 %v1255_v34, %v1652_v23 }
 0x129   :  { %1266 = vtanh.f32 %v342_v39  ;;  %v430_v43 = vsel %vm420_vm0, %v407_v38, 0.0 }
 0x12a   :  { %v1257_v47 = vpop.eup %1256  ;;  %422 = vadd.xlane.f32.xlu0 %v421_v42  ;;  %431 = vadd.xlane.f32.xlu1 %v430_v43  ;;  %v427_v54 = vsel %vm420_vm0, %v406_v44, 0.0 }
 0x12b   :  { %v1259_v48 = vpop.eup %1258  ;;  %v1040_v49 = vpop.f32.mrb[10].mxu0  ;;  %v409_v57 = vmul.f32 %v1257_v47, %v1652_v23 }
 0x12c   :  { %1268 = vtanh.f32 %v1040_v49  ;;  %v352_v52 = vpop.f32.mrb[11].mxu0  ;;  %v408_v53 = vmul.f32 %v1259_v48, %v1652_v23 }
 0x12d   :  { %1270 = vtanh.f32 %v352_v52  ;;  %v436_v20 = vsel %vm420_vm0, %v409_v57, 0.0 }
 0x12e   :  { %v1261_v58 = vpop.eup %1260  ;;  %428 = vadd.xlane.f32.xlu1 %v427_v54  ;;  %v433_v59 = vsel %vm420_vm0, %v408_v53, 0.0 }
 0x12f   :  { %v1263_v62 = vpop.eup %1262  ;;  %434 = vadd.xlane.f32.xlu0 %v433_v59  ;;  %v1043_v17 = vpop.f32.mrb[12].mxu0  ;;  %v411_v21 = vmul.f32 %v1261_v58, %v1652_v23 }
 0x130   :  { %1272 = vtanh.f32 %v1043_v17  ;;  %v362_v18 = vpop.f32.mrb[13].mxu0  ;;  %v410_v19 = vmul.f32 %v1263_v62, %v1652_v23 }
 0x131   :  { %1274 = vtanh.f32 %v362_v18  ;;  %v442_v29 = vsel %vm420_vm0, %v411_v21, 0.0  ;;  %v643_v21 = vld [vmem:[%s1876_s5 + $0x8] sm:$0xff] }
 0x132   :  { %v1265_v22 = vpop.eup %1264  ;;  %437 = vadd.xlane.f32.xlu1 %v436_v20  ;;  %v439_v24 = vsel %vm420_vm0, %v410_v19, 0.0  ;;  %v1880_v19 = vmov 0.0|0.0   ;;  %v642_v20 = vld [vmem:[%s1876_s5] sm:$0xff] }
 0x133   :  { %v1267_v25 = vpop.eup %1266  ;;  %440 = vadd.xlane.f32.xlu0 %v439_v24  ;;  %v1046_v26 = vpop.f32.mrb[14].mxu0  ;;  %v413_v32 = vmul.f32 %v1265_v22, %v1652_v23  ;;  %1181 = vmatprep.subr.bf16.mxu1 %v1880_v19  ;;  %v1882_v22 = vmov 0.0   ;;  %v1182_v24 = vpack.c.bf16 %v643_v21, %v642_v20 }
 0x134   :  { %1276 = vtanh.f32 %v1046_v26  ;;  %v372_v27 = vpop.f32.mrb[15].mxu0  ;;  %v412_v28 = vmul.f32 %v1267_v25, %v1652_v23  ;;  %1079 = vmatprep.mubr.msk.f32.mxu1 %vm1319_vm1, %v1882_v22  ;;  %v645_v25 = vld [vmem:[%s1876_s5 + $0x18] sm:$0xff] }
 0x135   :  { %1278 = vtanh.f32 %v372_v27  ;;  %v448_v39 = vsel %vm420_vm0, %v413_v32, 0.0  ;;  %1183 = vmatpush3.bf16.msra.mxu1 %v1182_v24  ;;  %v646_v27 = vld [vmem:[%s1876_s5 + $0x20] sm:$0xff]  ;;  %v648_v32 = vld [vmem:[%s1876_s5 + $0x30] sm:$0xff] }
 0x136   :  { %v1269_v33 = vpop.eup %1268  ;;  %443 = vadd.xlane.f32.xlu1 %v442_v29  ;;  %v445_v34 = vsel %vm420_vm0, %v412_v28, 0.0  ;;  %1184 = vmatprep.subr.bf16.mxu1 %v1880_v19  ;;  %v647_v28 = vld [vmem:[%s1876_s5 + $0x28] sm:$0xff] }
 0x137   :  { %v1271_v37 = vpop.eup %1270  ;;  %446 = vadd.xlane.f32.xlu0 %v445_v34  ;;  %v415_v42 = vmul.f32 %v1269_v33, %v1652_v23  ;;  %v1188_v29 = vpack.c.bf16 %v647_v28, %v646_v27  ;;  %v649_v33 = vld [vmem:[%s1876_s5 + $0x38] sm:$0xff] }
 0x138   :  { %v414_v38 = vmul.f32 %v1271_v37, %v1652_v23  ;;  %v1191_v34 = vpack.c.bf16 %v649_v33, %v648_v32  ;;  %v650_v37 = vld [vmem:[%s1876_s5 + $0x40] sm:$0xff] }
 0x139   :  { %v454_v49 = vsel %vm420_vm0, %v415_v42, 0.0  ;;  %v652_v42 = vld [vmem:[%s1876_s5 + $0x50] sm:$0xff] }
 0x13a   :  { %v1273_v43 = vpop.eup %1272  ;;  %449 = vadd.xlane.f32.xlu1 %v448_v39  ;;  %v451_v44 = vsel %vm420_vm0, %v414_v38, 0.0  ;;  %v651_v38 = vld [vmem:[%s1876_s5 + $0x48] sm:$0xff] }
 0x13b   :  { %v1275_v47 = vpop.eup %1274  ;;  %452 = vadd.xlane.f32.xlu0 %v451_v44  ;;  %v417_v52 = vmul.f32 %v1273_v43, %v1652_v23  ;;  %v1194_v39 = vpack.c.bf16 %v651_v38, %v650_v37  ;;  %v653_v43 = vld [vmem:[%s1876_s5 + $0x58] sm:$0xff] }
 0x13c   :  { %v416_v48 = vmul.f32 %v1275_v47, %v1652_v23  ;;  %v1197_v44 = vpack.c.bf16 %v653_v43, %v652_v42  ;;  %v654_v47 = vld [vmem:[%s1876_s5 + $0x60] sm:$0xff] }
 0x13d   :  { %v460_v59 = vsel %vm420_vm0, %v417_v52, 0.0  ;;  %v656_v52 = vld [vmem:[%s1876_s5 + $0x70] sm:$0xff] }
 0x13e   :  { %v1277_v53 = vpop.eup %1276  ;;  %455 = vadd.xlane.f32.xlu1 %v454_v49  ;;  %v457_v54 = vsel %vm420_vm0, %v416_v48, 0.0  ;;  %v655_v48 = vld [vmem:[%s1876_s5 + $0x68] sm:$0xff] }
 0x13f   :  { %v1279_v57 = vpop.eup %1278  ;;  %458 = vadd.xlane.f32.xlu0 %v457_v54  ;;  %v419_v62 = vmul.f32 %v1277_v53, %v1652_v23  ;;  %v1200_v49 = vpack.c.bf16 %v655_v48, %v654_v47  ;;  %v657_v53 = vld [vmem:[%s1876_s5 + $0x78] sm:$0xff] }
 0x140   :  { %v418_v58 = vmul.f32 %v1279_v57, %v1652_v23  ;;  %v644_v23 = vld [vmem:[%s1876_s5 + $0x10] sm:$0xff]  ;;  %v1203_v54 = vpack.c.bf16 %v657_v53, %v656_v52 }
 0x141   :  { %v466_v18 = vsel %vm420_vm0, %v419_v62, 0.0  ;;  %v1185_v26 = vpack.c.bf16 %v645_v25, %v644_v23 }
 0x142   :  { %461 = vadd.xlane.f32.xlu1 %v460_v59  ;;  %v463_v17 = vsel %vm420_vm0, %v418_v58, 0.0 }
 0x143   :  { %464 = vadd.xlane.f32.xlu0 %v463_v17  ;;  %1186 = vmatpush3.bf16.msra.mxu1 %v1185_v26 }
 0x144   :  { %1187 = vmatprep.subr.bf16.mxu1 %v1880_v19 }
 0x146   :  { %467 = vadd.xlane.f32.xlu1 %v466_v18 }
 0x147   :  { %1189 = vmatpush3.bf16.msra.mxu1 %v1188_v29 }
 0x148   :  { %1190 = vmatprep.subr.bf16.mxu1 %v1880_v19 }
 0x14b   :  { %1192 = vmatpush3.bf16.msra.mxu1 %v1191_v34 }
 0x14c   :  { %1193 = vmatprep.subr.bf16.mxu1 %v1880_v19 }
 0x14f   :  { %1195 = vmatpush3.bf16.msra.mxu1 %v1194_v39 }
 0x150   :  { %1196 = vmatprep.subr.bf16.mxu1 %v1880_v19 }
 0x153   :  { %1198 = vmatpush3.bf16.msra.mxu1 %v1197_v44 }
 0x154   :  { %1199 = vmatprep.subr.bf16.mxu1 %v1880_v19 }
 0x157   :  { %1201 = vmatpush3.bf16.msra.mxu1 %v1200_v49 }
 0x158   :  { %1202 = vmatprep.subr.bf16.mxu1 %v1880_v19 }
 0x15b   :  { %1204 = vmatpush3.bf16.msra.mxu1 %v1203_v54 }
 0x15c   :  { %1205 = vmatprep.subr.bf16.mxu1 %v1880_v19 }
 0x1b3   :  { %v426_v57 = vpop.xlane.xlu0 %425 }
 0x1b7   :  { %v423_v58 = vpop.xlane.xlu0 %422  ;;  %v432_v59 = vpop.xlane.xlu1 %431 }
 0x1bb   :  { %v429_v62 = vpop.xlane.xlu1 %428 }
 0x1bc   :  { %v435_v17 = vpop.xlane.xlu0 %434 }
 0x1bd   :  { %v469_v32 = vmax.f32 %v423_v58, %v435_v17 }
 0x1bf   :  { %v438_v18 = vpop.xlane.xlu1 %437 }
 0x1c0   :  { %v441_v20 = vpop.xlane.xlu0 %440  ;;  %v470_v28 = vmax.f32 %v426_v57, %v438_v18 }
 0x1c1   :  { %v471_v33 = vmax.f32 %v429_v62, %v441_v20 }
 0x1c3   :  { %v444_v21 = vpop.xlane.xlu1 %443 }
 0x1c4   :  { %v447_v23 = vpop.xlane.xlu0 %446  ;;  %v472_v34 = vmax.f32 %v432_v59, %v444_v21 }
 0x1c5   :  { %v473_v39 = vmax.f32 %v469_v32, %v447_v23 }
 0x1c7   :  { %v450_v24 = vpop.xlane.xlu1 %449 }
 0x1c8   :  { %v453_v25 = vpop.xlane.xlu0 %452  ;;  %v474_v37 = vmax.f32 %v470_v28, %v450_v24 }
 0x1c9   :  { %v475_v42 = vmax.f32 %v471_v33, %v453_v25 }
 0x1cb   :  { %v1745_v26 = vpop.xlane.xlu1 %455 }
 0x1cc   :  { %v1747_v27 = vpop.xlane.xlu0 %458  ;;  %v476_v43 = vmax.f32 %v472_v34, %v1745_v26 }
 0x1cd   :  { %v477_v48 = vmax.f32 %v473_v39, %v1747_v27 }
 0x1cf   :  { %v1749_v29 = vpop.xlane.xlu1 %461 }
 0x1d0   :  { %v1751_v38 = vpop.xlane.xlu0 %464  ;;  %v478_v44 = vmax.f32 %v474_v37, %v1749_v29 }
 0x1d1   :  { %v479_v49 = vmax.f32 %v475_v42, %v1751_v38 }
 0x1d2   :  { %v481_v53 = vmax.f32 %v477_v48, %v478_v44 }
 0x1d3   :  { %v1755_v47 = vpop.xlane.xlu1 %467 }
 0x1d4   :  { %v480_v52 = vmax.f32 %v476_v43, %v1755_v47 }
 0x1d6   :  { %v482_v54 = vmax.f32 %v479_v49, %v480_v52 }
 0x1d8   :  { %v483_v19 = vmax.f32 %v481_v53, %v482_v54 }
 0x1da   :  { %v484_v28 = vsub.f32 %v423_v58, %v483_v19  ;;  %v485_v22 = vsub.f32 %v426_v57, %v483_v19  ;;  %v486_v16 = vsub.f32 %v429_v62, %v483_v19  ;;  %v487_v32 = vsub.f32 %v432_v59, %v483_v19 }
 0x1db   :  { %v488_v34 = vsub.f32 %v435_v17, %v483_v19  ;;  %v489_v37 = vsub.f32 %v438_v18, %v483_v19  ;;  %v490_v39 = vsub.f32 %v441_v20, %v483_v19  ;;  %v491_v12 = vsub.f32 %v444_v21, %v483_v19 }
 0x1dc   :  { %v500_v33 = vmul.f32 1.442695, %v484_v28  ;;  %v502_v15 = vmul.f32 1.442695, %v485_v22  ;;  %v504_v14 = vmul.f32 1.442695, %v486_v16  ;;  %v492_v44 = vsub.f32 %v447_v23, %v483_v19 }
 0x1dd   :  { %v506_v13 = vmul.f32 1.442695, %v487_v32  ;;  %v508_v42 = vmul.f32 1.442695, %v488_v34  ;;  %v510_v43 = vmul.f32 1.442695, %v489_v37  ;;  %v493_v57 = vsub.f32 %v450_v24, %v483_v19 }
 0x1de   :  { %1280 = vpow2.f32 %v500_v33  ;;  %v512_v58 = vmul.f32 1.442695, %v490_v39  ;;  %v514_v59 = vmul.f32 1.442695, %v491_v12  ;;  %v494_v17 = vsub.f32 %v453_v25, %v483_v19 }
 0x1df   :  { %1282 = vpow2.f32 %v502_v15  ;;  %v516_v16 = vmul.f32 1.442695, %v492_v44  ;;  %v495_v20 = vsub.f32 %v1745_v26, %v483_v19  ;;  %v496_v23 = vsub.f32 %v1747_v27, %v483_v19 }
 0x1e0   :  { %1284 = vpow2.f32 %v504_v14  ;;  %v518_v14 = vmul.f32 1.442695, %v493_v57  ;;  %v520_v48 = vmul.f32 1.442695, %v494_v17  ;;  %v497_v12 = vsub.f32 %v1749_v29, %v483_v19 }
 0x1e1   :  { %1286 = vpow2.f32 %v506_v13  ;;  %v522_v25 = vmul.f32 1.442695, %v495_v20  ;;  %v498_v54 = vsub.f32 %v1751_v38, %v483_v19  ;;  %v524_v26 = vmul.f32 1.442695, %v496_v23 }
 0x1e2   :  { %1288 = vpow2.f32 %v508_v42  ;;  %v499_v33 = vsub.f32 %v1755_v47, %v483_v19  ;;  %v526_v27 = vmul.f32 1.442695, %v497_v12 }
 0x1e3   :  { %1290 = vpow2.f32 %v510_v43  ;;  %v528_v39 = vmul.f32 1.442695, %v498_v54 }
 0x1e4   :  { %1292 = vpow2.f32 %v512_v58  ;;  %v530_v43 = vmul.f32 1.442695, %v499_v33 }
 0x1e5   :  { %1294 = vpow2.f32 %v514_v59 }
 0x1e6   :  { %1296 = vpow2.f32 %v516_v16 }
 0x1e7   :  { %1298 = vpow2.f32 %v518_v14 }
 0x1e8   :  { %v1281_v62 = vpop.eup %1280  ;;  %1300 = vpow2.f32 %v520_v48 }
 0x1e9   :  { %v1283_v22 = vpop.eup %1282  ;;  %1302 = vpow2.f32 %v522_v25 }
 0x1ea   :  { %v532_v18 = vadd.f32 %v1283_v22, %v1281_v62  ;;  %v1285_v15 = vpop.eup %1284  ;;  %1304 = vpow2.f32 %v524_v26 }
 0x1eb   :  { %v1287_v13 = vpop.eup %1286  ;;  %1306 = vpow2.f32 %v526_v27 }
 0x1ec   :  { %v533_v21 = vadd.f32 %v1285_v15, %v532_v18  ;;  %v1289_v49 = vpop.eup %1288  ;;  %1308 = vpow2.f32 %v528_v39 }
 0x1ed   :  { %v1291_v53 = vpop.eup %1290  ;;  %1310 = vpow2.f32 %v530_v43 }
 0x1ee   :  { %v534_v24 = vadd.f32 %v1287_v13, %v533_v21  ;;  %v1293_v32 = vpop.eup %1292 }
 0x1ef   :  { %v1295_v37 = vpop.eup %1294 }
 0x1f0   :  { %v535_v52 = vadd.f32 %v1289_v49, %v534_v24  ;;  %v1297_v29 = vpop.eup %1296 }
 0x1f1   :  { %v1299_v58 = vpop.eup %1298 }
 0x1f2   :  { %v536_v28 = vadd.f32 %v1291_v53, %v535_v52  ;;  %v1301_v57 = vpop.eup %1300 }
 0x1f3   :  { %v1303_v17 = vpop.eup %1302 }
 0x1f4   :  { %v537_v34 = vadd.f32 %v1293_v32, %v536_v28  ;;  %v1305_v19 = vpop.eup %1304 }
 0x1f5   :  { %v1307_v18 = vpop.eup %1306 }
 0x1f6   :  { %v538_v42 = vadd.f32 %v1295_v37, %v537_v34  ;;  %v1309_v14 = vpop.eup %1308 }
 0x1f7   :  { %v1311_v23 = vpop.eup %1310 }
 0x1f8   :  { %v539_v44 = vadd.f32 %v1297_v29, %v538_v42 }
 0x1fa   :  { %v540_v38 = vadd.f32 %v1299_v58, %v539_v44 }
 0x1fc   :  { %v541_v59 = vadd.f32 %v1301_v57, %v540_v38 }
 0x1fe   :  { %v542_v16 = vadd.f32 %v1303_v17, %v541_v59 }
 0x200   :  { %v543_v47 = vadd.f32 %v1305_v19, %v542_v16 }
 0x202   :  { %v544_v20 = vadd.f32 %v1307_v18, %v543_v47 }
 0x204   :  { %v545_v21 = vadd.f32 %v1309_v14, %v544_v20 }
 0x206   :  { %v546_v48 = vadd.f32 %v1311_v23, %v545_v21 }
 0x208   :  { %1312 = vrcp.f32 %v546_v48 }
 0x212   :  { %v1313_v24 = vpop.eup %1312 }
 0x213   :  { %v548_v12 = vmul.f32 %v1313_v24, %v1281_v62  ;;  %v549_v25 = vmul.f32 %v1313_v24, %v1283_v22  ;;  %v550_v52 = vmul.f32 %v1313_v24, %v1285_v15  ;;  %v551_v28 = vmul.f32 %v1313_v24, %v1287_v13 }
 0x214   :  { %v552_v33 = vmul.f32 %v1313_v24, %v1289_v49  ;;  %v553_v43 = vmul.f32 %v1313_v24, %v1291_v53  ;;  %v554_v62 = vmul.f32 %v1313_v24, %v1293_v32  ;;  %v555_v59 = vmul.f32 %v1313_v24, %v1295_v37 }
 0x215   :  { %v595_v54 = vmul.f32 %v1382_v9, %v548_v12  ;;  %v596_v26 = vmul.f32 %v1430_v30, %v549_v25  ;;  %v597_v27 = vmul.f32 %v1435_v31, %v550_v52  ;;  %v564_v39 = vmul.f32 %v548_v12, %v1555_v0 }
 0x216   :  { %v565_v42 = vmul.f32 %v549_v25, %v1562_v1  ;;  %v598_v44 = vmul.f32 %v1448_v35, %v551_v28  ;;  %v599_v22 = vmul.f32 %v1453_v36, %v552_v33  ;;  %v600_v30 = vmul.f32 %v1466_v40, %v553_v43 }
 0x217   :  { %v611_v34 = vadd.f32 %v596_v26, %v595_v54  ;;  %v566_v31 = vmul.f32 %v550_v52, %v1567_v2  ;;  %v556_v49 = vmul.f32 %v1313_v24, %v1297_v29  ;;  %v601_v0 = vmul.f32 %v1471_v41, %v554_v62 }
 0x218   :  { %v580_v9 = vadd.f32 %v565_v42, %v564_v39  ;;  %v557_v53 = vmul.f32 %v1313_v24, %v1299_v58  ;;  %v602_v35 = vmul.f32 %v1484_v45, %v555_v59  ;;  %v567_v32 = vmul.f32 %v551_v28, %v1574_v3  ;;  %v630_v42 = vld [vmem:[%s1877_s4 + $0x20] sm:$0xff] }
 0x219   :  { %v612_v38 = vadd.f32 %v611_v34, %v597_v27  ;;  %v558_v36 = vmul.f32 %v1313_v24, %v1301_v57  ;;  %v603_v20 = vmul.f32 %v1489_v46, %v556_v49  ;;  %v559_v40 = vmul.f32 %v1313_v24, %v1303_v17 }
 0x21a   :  { %v581_v1 = vadd.f32 %v580_v9, %v566_v31  ;;  %v604_v48 = vmul.f32 %v1502_v50, %v557_v53  ;;  %v568_v29 = vmul.f32 %v552_v33, %v1579_v4  ;;  %v560_v41 = vmul.f32 %v1313_v24, %v1305_v19  ;;  %v629_v33 = vld [vmem:[%s1877_s4 + $0x18] sm:$0xff]  ;;  %v1895_v31 = vld [vmem:[#allocation2_spill] sm:$0xff] }
 0x21b   :  { %v613_v15 = vadd.f32 %v612_v38, %v598_v44  ;;  %v605_v12 = vmul.f32 %v1507_v51, %v558_v36  ;;  %v1781_v45 = vmul.f32 %v1313_v24, %v1307_v18  ;;  %v606_v3 = vmul.f32 %v1520_v55, %v559_v40 }
 0x21c   :  { %v582_v21 = vadd.f32 %v581_v1, %v567_v32  ;;  %v569_v46 = vmul.f32 %v553_v43, %v1586_v5  ;;  %v1785_v52 = vmul.f32 %v1313_v24, %v1309_v14  ;;  %v607_v17 = vmul.f32 %v1525_v56, %v560_v41  ;;  %v626_v5 = vld [vmem:[%s1877_s4] sm:$0xff]  ;;  %v627_v56 = vld [vmem:[%s1877_s4 + $0x8] sm:$0xff] }
 0x21d   :  { %v614_v13 = vadd.f32 %v613_v15, %v599_v22  ;;  %v1788_v26 = vmul.f32 %v1313_v24, %v1311_v23  ;;  %v608_v51 = vmul.f32 %v1538_v60, %v1781_v45  ;;  %v570_v19 = vmul.f32 %v554_v62, %v1591_v6  ;;  %v631_v43 = vld [vmem:[%s1877_s4 + $0x28] sm:$0xff]  ;;  %v632_v62 = vld [vmem:[%s1877_s4 + $0x30] sm:$0xff]  ;;  %v633_v22 = vld [vmem:[%s1877_s4 + $0x38] sm:$0xff] }
 0x21e   :  { %v583_v25 = vadd.f32 %v582_v21, %v568_v29  ;;  %v609_v55 = vmul.f32 %v1543_v61, %v1785_v52  ;;  %v571_v24 = vmul.f32 %v555_v59, %v1598_v7  ;;  %v1206_v6 = vpack.c.bf16 %v627_v56, %v626_v5  ;;  %v628_v61 = vld [vmem:[%s1877_s4 + $0x10] sm:$0xff]  ;;  %v638_v32 = vld [vmem:[%s1877_s4 + $0x60] sm:$0xff] }
 0x21f   :  { %v615_v16 = vadd.f32 %v614_v13, %v600_v30  ;;  %v610_v23 = vmul.f32 %v1550_v63, %v1788_v26  ;;  %v572_v34 = vmul.f32 %v556_v49, %v1603_v8  ;;  %v1209_v39 = vpack.c.bf16 %v629_v33, %v628_v61  ;;  %v635_v30 = vld [vmem:[%s1877_s4 + $0x48] sm:$0xff] }
 0x220   :  { %v584_v54 = vadd.f32 %v583_v25, %v569_v46  ;;  %v1893_v63 = vmov 0.0   ;;  %v1894_v7 = vmov 0.0|0.0   ;;  %v573_v38 = vmul.f32 %v557_v53, %v1610_v10  ;;  %v634_v10 = vld [vmem:[%s1877_s4 + $0x40] sm:$0xff]  ;;  %v1896_v53 = vld [vmem:[#allocation3_spill] sm:$0xff] }
 0x221   :  { %v616_v47 = vadd.f32 %v615_v16, %v601_v0  ;;  %v1212_v8 = vpack.c.bf16 %v631_v43, %v630_v42  ;;  %v574_v9 = vmul.f32 %v558_v36, %v1615_v11  ;;  %v1215_v59 = vpack.c.bf16 %v633_v22, %v632_v62  ;;  %v636_v11 = vld [vmem:[%s1877_s4 + $0x50] sm:$0xff]  ;;  %v637_v16 = vld [vmem:[%s1877_s4 + $0x58] sm:$0xff]  ;;  %v639_v36 = vld [vmem:[%s1877_s4 + $0x68] sm:$0xff] }
 0x222   :  { %v585_v14 = vadd.f32 %v584_v54, %v570_v19  ;;  %v575_v49 = vmul.f32 %v559_v40, %v1895_v31  ;;  %v1218_v0 = vpack.c.bf16 %v635_v30, %v634_v10  ;;  %v1224_v40 = vpack.c.bf16 %v639_v36, %v638_v32  ;;  %v835_v54 = vld [vmem:[%s1878_s6] ss:$0 sm:$0xff] }
 0x223   :  { %v617_v37 = vadd.f32 %v616_v47, %v602_v35  ;;  %v576_v35 = vmul.f32 %v560_v41, %v1896_v53  ;;  %v1221_v47 = vpack.c.bf16 %v637_v16, %v636_v11  ;;  %v1898_v41 = vld [vmem:[#allocation5_spill] sm:$0xff] }
 0x224   :  { %v586_v27 = vadd.f32 %v585_v14, %v571_v24 }
 0x225   :  { %v618_v2 = vadd.f32 %v617_v37, %v603_v20  ;;  %v1897_v37 = vld [vmem:[#allocation4_spill] sm:$0xff] }
 0x226   :  { %v587_v44 = vadd.f32 %v586_v27, %v572_v34  ;;  %v577_v21 = vmul.f32 %v1781_v45, %v1897_v37  ;;  %v1899_v45 = vld [vmem:[#allocation6_spill] sm:$0xff] }
 0x227   :  { %v619_v58 = vadd.f32 %v618_v2, %v604_v48  ;;  %v640_v48 = vld [vmem:[%s1877_s4 + $0x70] sm:$0xff]  ;;  %v641_v2 = vld [vmem:[%s1877_s4 + $0x78] sm:$0xff] }
 0x228   :  { %v588_v15 = vadd.f32 %v587_v44, %v573_v38 }
 0x229   :  { %v620_v57 = vadd.f32 %v619_v58, %v605_v12  ;;  %v578_v12 = vmul.f32 %v1785_v52, %v1898_v41  ;;  %v1227_v58 = vpack.c.bf16 %v641_v2, %v640_v48 }
 0x22a   :  { %v589_v13 = vadd.f32 %v588_v15, %v574_v9 }
 0x22b   :  { %v621_v50 = vadd.f32 %v620_v57, %v606_v3  ;;  %v579_v3 = vmul.f32 %v1788_v26, %v1899_v45 }
 0x22c   :  { %v590_v1 = vadd.f32 %v589_v13, %v575_v49 }
 0x22d   :  { %v622_v4 = vadd.f32 %v621_v50, %v607_v17 }
 0x22e   :  { %v591_v20 = vadd.f32 %v590_v1, %v576_v35 }
 0x22f   :  { %v623_v18 = vadd.f32 %v622_v4, %v608_v51 }
 0x230   :  { %v592_v29 = vadd.f32 %v591_v20, %v577_v21 }
 0x231   :  { %v624_v60 = vadd.f32 %v623_v18, %v609_v55 }
 0x232   :  { %v593_v25 = vadd.f32 %v592_v29, %v578_v12 }
 0x233   :  { %v625_v28 = vadd.f32 %v624_v60, %v610_v23 }
 0x234   :  { %v594_v57 = vadd.f32 %v593_v25, %v579_v3 }
 0x235   :  { %1080 = vmatmul.mubr.f32.vlgmr.msra.gmra.mrb[0].mxu1 %v625_v28 }
 0x236   :  { %1207 = vmatpush3.bf16.msra.mxu1 %v1206_v6  ;;  %1114 = vmatprep.mubr.msk.f32.mxu1 %vm1319_vm1, %v1893_v63 }
 0x237   :  { %1208 = vmatprep.subr.bf16.mxu1 %v1894_v7 }
 0x23a   :  { %1210 = vmatpush3.bf16.msra.mxu1 %v1209_v39 }
 0x23b   :  { %1211 = vmatprep.subr.bf16.mxu1 %v1894_v7 }
 0x23e   :  { %1213 = vmatpush3.bf16.msra.mxu1 %v1212_v8 }
 0x23f   :  { %1214 = vmatprep.subr.bf16.mxu1 %v1894_v7 }
 0x242   :  { %1216 = vmatpush3.bf16.msra.mxu1 %v1215_v59 }
 0x243   :  { %1217 = vmatprep.subr.bf16.mxu1 %v1894_v7 }
 0x246   :  { %1219 = vmatpush3.bf16.msra.mxu1 %v1218_v0 }
 0x247   :  { %1220 = vmatprep.subr.bf16.mxu1 %v1894_v7 }
 0x24a   :  { %1222 = vmatpush3.bf16.msra.mxu1 %v1221_v47 }
 0x24b   :  { %1223 = vmatprep.subr.bf16.mxu1 %v1894_v7 }
 0x24e   :  { %1225 = vmatpush3.bf16.msra.mxu1 %v1224_v40 }
 0x24f   :  { %1226 = vmatprep.subr.bf16.mxu1 %v1894_v7 }
 0x252   :  { %1228 = vmatpush3.bf16.msra.mxu1 %v1227_v58 }
 0x255   :  { %1115 = vmatmul.mubr.f32.vlgmr.msra.gmra.mrb[2].mxu1 %v594_v57 }
 0x308   :  { %v724_v46 = vpop.f32.mrb[0].mxu1 }
 0x309   :  { %v1081_v17 = vpop.f32.mrb[1].mxu1 }
 0x328   :  { %v794_v50 = vpop.f32.mrb[2].mxu1 }
 0x329   :  { %v795_v51 = vadd.f32 %v794_v50, %v724_v46  ;;  %v1116_v52 = vpop.f32.mrb[3].mxu1 }
 0x32b   :  { %v805_v4 = vadd.f32 %v835_v54, %v795_v51 }
 0x32d   :  { %v836_v19 = vmul.f32 -1.442695, %v805_v4 }
 0x32f   :  { %1314 = vpow2.f32 %v836_v19 }
 0x339   :  { %v1315_v55 = vpop.eup %1314 }
 0x33a   :  { %v809_v18 = vadd.f32 1.0, %v1315_v55 }
 0x33c   :  { %1316 = vrcp.f32 %v809_v18 }
 0x346   :  { %v1317_v26 = vpop.eup %1316 }
 0x347   :  { %813 = vst.msk [vmem:[%s1879_s7] sm:$0xff] %vm812_vm2, %v1317_v26 }

// kernel: bigru_atten2_forward.2
= control target key start
LH: loop header
LB: loop body
LE: loop exit
PB: predicated region body
PF: predicated region fallthrough
CT: control target
= control target key end

     0   :  { %s3060_s12 = smov 0   ;;  %s3062_s13 = smov 0   ;;  %s3605_s0 = inlined_call_operand.vmem [shape: f32[2,16,8,384], index: 0, kind: input, shape index: {}]   ;;  %s3606_s1 = inlined_call_operand.vmem [shape: f32[2,128,384], index: 1, kind: input, shape index: {}]   ;;  %s3607_s2 = inlined_call_operand.vmem [shape: f32[2,1,128], index: 2, kind: input, shape index: {}]   ;;  %s3608_s3 = inlined_call_operand.vmem [shape: f32[2,16,8,128], index: 3, kind: output, shape index: {}]  }
   0x1   :  { %s3064_s14 = smov 0   ;;  %s3066_s15 = smov 0  }
   0x2   :  { %s3068_s16 = smov 0  }
   0x3 LB: > { %s22_s17 = sadd.s32 1, %s3026_s14  ;;  %s25_s18 = sadd.s32 1, %s3030_s15  ;;  %s3034_s16 = sphi %s3068_s16, %s13_s16   ;;  %s3030_s15 = sphi %s3066_s15, %s3612_s15   ;;  %s3026_s14 = sphi %s3064_s14, %s3611_s14   ;;  %s3022_s13 = sphi %s3062_s13, %s3610_s13   ;;  %s3018_s12 = sphi %s3060_s12, %s3609_s12  }
   0x4   : > { %p23_p0 = scmp.ge.s32.totalorder %s22_s17, 2  ;;  %p1934_p1 = scmp.ge.s32.totalorder %s3034_s16, 1 }
   0x5   : > { %p201_p2 = scmp.lt.s32.totalorder %s3034_s16, 5 }
   0x6   : > { %s3614_s17 = smov (%p23_p0, %s22_s17), 0  ;;  %s3616_s18 = smov (!%p23_p0, %s25_s18), %s3030_s15 }
   0x7   : > { %p202_p3 = pnand %p1934_p1, %p201_p2  ;;  %p27_p4 = scmp.ge.s32.totalorder %s3616_s18, 2 }
   0x8   : > { %s1935_s19 = sshll.u32 (!%p202_p3), %s3018_s12, 1  ;;  %p255_p5 = scmp.lt.s32.totalorder (!%p202_p3), %s3022_s13, 1 }
   0x9   : > { %s3618_s18 = smov (%p27_p4, %s3616_s18), 0  ;;  %205 = sbr.rel (%p202_p3) target bundleno = 2138 (0x85a), region = 32 }
   0xa   : > { %s251_s20 = ssub.s32 (!%p202_p3), 1, %s1935_s19  ;;  %p1943_p7 = scmp.ne.s32.totalorder (!%p202_p3), %s3018_s12, 0 }
   0xb   : > { %s252_s21 = smul.u32 (!%p202_p3), %s3022_s13, %s251_s20 }
   0xd   : > { %s253_s23 = sadd.s32 (!%p202_p3), %s3018_s12, %s252_s21 }
   0xe   : > { %s1936_s24 = sshll.u32 (!%p202_p3), %s253_s23, 3 }
   0xf   : > { %p257_p6 = scmp.lt.s32.totalorder (!%p202_p3), %s1936_s24, 15 }
  0x10   : > { %s3098_s22 = scalar_select %p255_p5, %s3022_s13, 1 }
  0x11   : > { %s3620_s24 = smov (!%p257_p6, %s1936_s24), 15  ;;  %v3036_v0 = vmov (!%p1943_p7), 0.0  }
  0x12   : > { %s2870_s25 = smul.u32 48, %s3098_s22  ;;  %s276_s29 = scalar_lea.vmem %s3607_s2, %s3098_s22  ;;  %299 = vst [vmem:[#allocation2] sm:$0xff] (!%p1943_p7), %v3036_v0 }
  0x13   : > { %s2871_s26 = smul.u32 384, %s3098_s22  ;;  %s1941_s30 = sshll.u32 %s3098_s22, 4 }
  0x14   : > { %s2869_s7 = smul.u32 3, %s3620_s24  ;;  %s287_s8 = sadd.s32 %s1941_s30, %s3620_s24 }
  0x15   : > { %s3111_s6 = scalar_lea.vmem %s3606_s1, %s2871_s26  ;;  %s1942_s9 = sshll.u32 %s287_s8, 3 }
  0x16   : > { %s261_s10 = sadd.s32 %s2870_s25, %s2869_s7  ;;  %s3116_s20 = scalar_lea.vmem %s3608_s3, %s1942_s9 }
  0x17   : > { %s1937_s21 = sshll.u32 %s261_s10, 3  ;;  %298 = sbr.rel (%p1943_p7) target bundleno = 30 (0x1e), region = 36 }
  0x18   : > { %s3121_s28 = scalar_lea.vmem %s3605_s0, %s1937_s21 }
  0x1e PF: > { %v301_v1 = vld [vmem:[%s3111_s6 + $0x8] sm:$0xff]  ;;  %v304_v2 = vld [vmem:[%s3111_s6 + $0x20] sm:$0xff]  ;;  %v303_v5 = vld [vmem:[%s3111_s6 + $0x18] sm:$0xff]  ;;  %v3037_v8 = vmov 0.0|0.0   ;;  %v3038_v9 = vmov 0.0   ;;  %vm3039_vm0 = vmmov 0  }
  0x1f   : > { %v300_v3 = vld [vmem:[%s3111_s6] sm:$0xff]  ;;  %v3127_v4 = vpack.c.bf16 %v304_v2, %v301_v1  ;;  %v307_v6 = vld [vmem:[%s3111_s6 + $0x38] sm:$0xff]  ;;  %v310_v7 = vld [vmem:[%s3111_s6 + $0x50] sm:$0xff]  ;;  %2453 = vmatprep.subr.bf16.mxu1 %v3037_v8  ;;  %421 = vmatprep.mubr.f32.mxu0 %v3038_v9  ;;  %s2003_s12 = smul.u32 168, %s3022_s13  ;;  %s1971_s19 = sshll.u32 %s3022_s13, 3 }
  0x20   : > { %v3134_v10 = vpack.c.bf16 %v303_v5, %v300_v3  ;;  %v3136_v11 = vpack.c.bf16 %v310_v7, %v307_v6  ;;  %v306_v12 = vld [vmem:[%s3111_s6 + $0x30] sm:$0xff]  ;;  %v309_v13 = vld [vmem:[%s3111_s6 + $0x48] sm:$0xff]  ;;  %2173 = vmatprep.mubr.msk.f32.mxu1 %vm3039_vm0, %v3038_v9  ;;  %v316_v15 = vld [vmem:[%s3111_s6 + $0x80] sm:$0xff]  ;;  %s1949_s30 = smul.u32 56, %s3022_s13  ;;  %s1844_s21 = scalar_lea.vmem %s3116_s20, %s1971_s19 }
  0x21   : > { %v313_v14 = vld [vmem:[%s3111_s6 + $0x68] sm:$0xff]  ;;  %2422 = vmatprep.subr.bf16.mxu0 %v3127_v4  ;;  %v3146_v16 = vpack.c.bf16 %v309_v13, %v306_v12  ;;  %v312_v18 = vld [vmem:[%s3111_s6 + $0x60] sm:$0xff]  ;;  %v315_v19 = vld [vmem:[%s3111_s6 + $0x78] sm:$0xff]  ;;  %s353_s24 = scalar_lea.vmem %s3121_s28, %s2003_s12  ;;  %s1956_s5 = smul.u32 40, %s3022_s13 }
  0x22   : > { %2424 = vmatpush1.bf16.msra.mxu0 %v3134_v10  ;;  %v3149_v17 = vpack.c.bf16 %v316_v15, %v313_v14  ;;  %v319_v20 = vld [vmem:[%s3111_s6 + $0x98] sm:$0xff]  ;;  %v322_v21 = vld [vmem:[%s3111_s6 + $0xb0] sm:$0xff]  ;;  %v3156_v22 = vpack.c.bf16 %v315_v19, %v312_v18  ;;  %v321_v25 = vld [vmem:[%s3111_s6 + $0xa8] sm:$0xff]  ;;  %s527_s22 = scalar_lea.vmem %s3116_s20, %s1949_s30  ;;  %s1958_s7 = smul.u32 72, %s3022_s13 }
  0x23   : > { %2426 = vmatprep.subr.bf16.mxu0 %v3136_v11  ;;  %v318_v23 = vld [vmem:[%s3111_s6 + $0x90] sm:$0xff]  ;;  %v3160_v24 = vpack.c.bf16 %v322_v21, %v319_v20  ;;  %v305_v27 = vld [vmem:[%s3111_s6 + $0x28] sm:$0xff]  ;;  %v328_v29 = vld [vmem:[%s3111_s6 + $0xe0] sm:$0xff]  ;;  %s1964_s9 = smul.u32 24, %s3022_s13  ;;  %s1050_s23 = ssub.s32 4, %s3022_s13 }
  0x24   : > { %v302_v26 = vld [vmem:[%s3111_s6 + $0x10] sm:$0xff]  ;;  %v325_v28 = vld [vmem:[%s3111_s6 + $0xc8] sm:$0xff]  ;;  %v308_v31 = vld [vmem:[%s3111_s6 + $0x40] sm:$0xff]  ;;  %v3172_v33 = vpack.c.bf16 %v321_v25, %v318_v23  ;;  %s1834_s8 = scalar_lea.vmem %s3121_s28, %s1958_s7  ;;  %s2004_s27 = smul.u32 24, %s1050_s23 }
  0x25   : > { %v3167_v30 = vpack.c.bf16 %v305_v27, %v302_v26  ;;  %v311_v32 = vld [vmem:[%s3111_s6 + $0x58] sm:$0xff]  ;;  %v324_v34 = vld [vmem:[%s3111_s6 + $0xc0] sm:$0xff]  ;;  %v3179_v36 = vpack.c.bf16 %v328_v29, %v325_v28  ;;  %v314_v38 = vld [vmem:[%s3111_s6 + $0x70] sm:$0xff]  ;;  %s1838_s10 = scalar_lea.vmem %s3116_s20, %s1964_s9  ;;  %s1841_s11 = scalar_lea.vmem %s3121_s28, %s1964_s9 }
  0x26   : > { %2428 = vmatpush1.bf16.msra.mxu0 %v3146_v16  ;;  %v3176_v35 = vpack.c.bf16 %v311_v32, %v308_v31  ;;  %v327_v37 = vld [vmem:[%s3111_s6 + $0xd8] sm:$0xff]  ;;  %v317_v39 = vld [vmem:[%s3111_s6 + $0x88] sm:$0xff]  ;;  %v334_v41 = vld [vmem:[%s3111_s6 + $0x110] sm:$0xff]  ;;  %s1053_s12 = scalar_lea.vmem %s3121_s28, %s2004_s27  ;;  %s1977_s26 = smul.u32 4294967224, %s3022_s13 }
  0x27   : > { %2430 = vmatprep.subr.bf16.mxu0 %v3149_v17  ;;  %2455 = vmatpush3.bf16.msra.mxu1 %v3167_v30  ;;  %v331_v40 = vld [vmem:[%s3111_s6 + $0xf8] sm:$0xff]  ;;  %v3188_v42 = vpack.c.bf16 %v327_v37, %v324_v34  ;;  %v330_v43 = vld [vmem:[%s3111_s6 + $0xf0] sm:$0xff]  ;;  %v3192_v44 = vpack.c.bf16 %v317_v39, %v314_v38  ;;  %v333_v46 = vld [vmem:[%s3111_s6 + $0x108] sm:$0xff] }
  0x28   : > { %2456 = vmatprep.subr.bf16.mxu1 %v3037_v8  ;;  %v3195_v45 = vpack.c.bf16 %v334_v41, %v331_v40  ;;  %v320_v47 = vld [vmem:[%s3111_s6 + $0xa0] sm:$0xff]  ;;  %v323_v48 = vld [vmem:[%s3111_s6 + $0xb8] sm:$0xff]  ;;  %v337_v49 = vld [vmem:[%s3111_s6 + $0x128] sm:$0xff]  ;;  %v3204_v51 = vpack.c.bf16 %v333_v46, %v330_v43  ;;  %s1852_s30 = scalar_lea.vmem %s3121_s28, %s1977_s26 }
  0x29   : > { %v340_v50 = vld [vmem:[%s3111_s6 + $0x140] sm:$0xff]  ;;  %v3208_v53 = vpack.c.bf16 %v323_v48, %v320_v47  ;;  %v339_v55 = vld [vmem:[%s3111_s6 + $0x138] sm:$0xff]  ;;  %v326_v56 = vld [vmem:[%s3111_s6 + $0xd0] sm:$0xff] }
  0x2a   : > { %2432 = vmatpush1.bf16.msra.mxu0 %v3156_v22  ;;  %v336_v52 = vld [vmem:[%s3111_s6 + $0x120] sm:$0xff]  ;;  %v3211_v54 = vpack.c.bf16 %v340_v50, %v337_v49  ;;  %v329_v57 = vld [vmem:[%s3111_s6 + $0xe8] sm:$0xff]  ;;  %v343_v58 = vld [vmem:[%s3111_s6 + $0x158] sm:$0xff] }
  0x2b   : > { %2434 = vmatprep.subr.bf16.mxu0 %v3160_v24  ;;  %2458 = vmatpush3.bf16.msra.mxu1 %v3176_v35  ;;  %v346_v59 = vld [vmem:[%s3111_s6 + $0x170] sm:$0xff]  ;;  %v3220_v60 = vpack.c.bf16 %v339_v55, %v336_v52  ;;  %v3224_v62 = vpack.c.bf16 %v329_v57, %v326_v56  ;;  %v345_v0 = vld [vmem:[%s3111_s6 + $0x168] sm:$0xff]  ;;  %v332_v1 = vld [vmem:[%s3111_s6 + $0x100] sm:$0xff] }
  0x2c   : > { %2459 = vmatprep.subr.bf16.mxu1 %v3037_v8  ;;  %v342_v61 = vld [vmem:[%s3111_s6 + $0x150] sm:$0xff]  ;;  %v3227_v63 = vpack.c.bf16 %v346_v59, %v343_v58  ;;  %v335_v2 = vld [vmem:[%s3111_s6 + $0x118] sm:$0xff]  ;;  %v341_v7 = vld [vmem:[%s3111_s6 + $0x148] sm:$0xff] }
  0x2d   : > { %v3234_v3 = vpack.c.bf16 %v345_v0, %v342_v61  ;;  %v3237_v5 = vpack.c.bf16 %v335_v2, %v332_v1  ;;  %v338_v6 = vld [vmem:[%s3111_s6 + $0x130] sm:$0xff]  ;;  %v3244_v12 = vld [vmem:[#allocation2] sm:$0xff]  ;;  %v347_v15 = vld [vmem:[%s3111_s6 + $0x178] sm:$0xff] }
  0x2e   : > { %2436 = vmatpush1.bf16.msra.mxu0 %v3172_v33  ;;  %v3247_v13 = vpack.c.bf16 %v341_v7, %v338_v6  ;;  %v344_v14 = vld [vmem:[%s3111_s6 + $0x160] sm:$0xff]  ;;  %v355_v23 = vld [vmem:[%s353_s24 + $0x8] sm:$0xff]  ;;  %v356_v43 = vld [vmem:[%s353_s24 + $0x10] sm:$0xff]  ;;  %s1830_s6 = scalar_lea.vmem %s3116_s20, %s1956_s5 }
  0x2f   : > { %2438 = vmatprep.subr.bf16.mxu0 %v3179_v36  ;;  %2461 = vmatpush3.bf16.msra.mxu1 %v3192_v44  ;;  %v3255_v18 = vpack.c.bf16 %v347_v15, %v344_v14  ;;  %v354_v19 = vld [vmem:[%s353_s24] sm:$0xff]  ;;  %s1976_s24 = sshll.u32 %s1050_s23, 3 }
  0x30   : > { %2462 = vmatprep.subr.bf16.mxu1 %v3037_v8  ;;  %v3303_v38 = vld [vmem:[%s276_s29] ss:$0 sm:$0xff]  ;;  %s1950_s29 = smul.u32 120, %s3022_s13  ;;  %s1221_s25 = scalar_lea.vmem %s3116_s20, %s1976_s24 }
  0x32   : > { %2440 = vmatpush1.bf16.msra.mxu0 %v3188_v42  ;;  %s1826_s4 = scalar_lea.vmem %s3121_s28, %s1950_s29 }
  0x33   : > { %2442 = vmatprep.subr.bf16.mxu0 %v3195_v45  ;;  %2464 = vmatpush3.bf16.msra.mxu1 %v3208_v53  ;;  %v1951_v57 = vld [vmem:[%s1826_s4 + $0x18] sm:$0xff]  ;;  %v1952_v0 = vld [vmem:[%s1826_s4 + $0x20] sm:$0xff] }
  0x34   : > { %2465 = vmatprep.subr.bf16.mxu1 %v3037_v8 }
  0x36   : > { %2444 = vmatpush1.bf16.msra.mxu0 %v3204_v51 }
  0x37   : > { %2446 = vmatprep.subr.bf16.mxu0 %v3211_v54  ;;  %2467 = vmatpush3.bf16.msra.mxu1 %v3224_v62 }
  0x38   : > { %2468 = vmatprep.subr.bf16.mxu1 %v3037_v8 }
  0x3a   : > { %2448 = vmatpush1.bf16.msra.mxu0 %v3220_v60 }
  0x3b   : > { %2450 = vmatprep.subr.bf16.mxu0 %v3227_v63  ;;  %2470 = vmatpush3.bf16.msra.mxu1 %v3237_v5 }
  0x3c   : > { %2471 = vmatprep.subr.bf16.mxu1 %v3037_v8 }
  0x3e   : > { %2452 = vmatpush1.bf16.msra.mxu0 %v3234_v3 }
  0x3f   : > { %2478 = vmatprep.subr.bf16.mxu0 %v3127_v4  ;;  %2473 = vmatpush3.bf16.msra.mxu1 %v3247_v13 }
  0x40   : > { %2474 = vmatprep.subr.bf16.mxu1 %v3037_v8 }
  0x41   : > { %422 = vmatmul.mubr.f32.vlgmr.msra.gmra.mrb[0].mxu0 %v3244_v12 }
  0x42   : > { %2480 = vmatpush1.bf16.msra.mxu0 %v3134_v10  ;;  %601 = vmatprep.mubr.f32.mxu0 %v3038_v9 }
  0x43   : > { %2482 = vmatprep.subr.bf16.mxu0 %v3136_v11  ;;  %2476 = vmatpush3.bf16.msra.mxu1 %v3255_v18 }
  0x44   : > { %2509 = vmatprep.subr.bf16.mxu1 %v3037_v8 }
  0x46   : > { %2484 = vmatpush1.bf16.msra.mxu0 %v3146_v16  ;;  %2174 = vmatmul.mubr.f32.vlgmr.msra.gmra.mrb[0].mxu1 %v3244_v12 }
  0x47   : > { %2486 = vmatprep.subr.bf16.mxu0 %v3149_v17  ;;  %2511 = vmatpush3.bf16.msra.mxu1 %v3167_v30 }
  0x48   : > { %2512 = vmatprep.subr.bf16.mxu1 %v3037_v8  ;;  %2208 = vmatprep.mubr.msk.f32.mxu1 %vm3039_vm0, %v3038_v9 }
  0x4a   : > { %2488 = vmatpush1.bf16.msra.mxu0 %v3156_v22 }
  0x4b   : > { %2490 = vmatprep.subr.bf16.mxu0 %v3160_v24  ;;  %2514 = vmatpush3.bf16.msra.mxu1 %v3176_v35 }
  0x4c   : > { %2515 = vmatprep.subr.bf16.mxu1 %v3037_v8 }
  0x4e   : > { %2492 = vmatpush1.bf16.msra.mxu0 %v3172_v33 }
  0x4f   : > { %2494 = vmatprep.subr.bf16.mxu0 %v3179_v36  ;;  %2517 = vmatpush3.bf16.msra.mxu1 %v3192_v44 }
  0x50   : > { %2518 = vmatprep.subr.bf16.mxu1 %v3037_v8 }
  0x52   : > { %2496 = vmatpush1.bf16.msra.mxu0 %v3188_v42 }
  0x53   : > { %2498 = vmatprep.subr.bf16.mxu0 %v3195_v45  ;;  %2520 = vmatpush3.bf16.msra.mxu1 %v3208_v53 }
  0x54   : > { %2521 = vmatprep.subr.bf16.mxu1 %v3037_v8 }
  0x56   : > { %2500 = vmatpush1.bf16.msra.mxu0 %v3204_v51 }
  0x57   : > { %2502 = vmatprep.subr.bf16.mxu0 %v3211_v54  ;;  %2523 = vmatpush3.bf16.msra.mxu1 %v3224_v62 }
  0x58   : > { %2524 = vmatprep.subr.bf16.mxu1 %v3037_v8 }
  0x5a   : > { %2504 = vmatpush1.bf16.msra.mxu0 %v3220_v60 }
  0x5b   : > { %2506 = vmatprep.subr.bf16.mxu0 %v3227_v63  ;;  %2526 = vmatpush3.bf16.msra.mxu1 %v3237_v5 }
  0x5c   : > { %2527 = vmatprep.subr.bf16.mxu1 %v3037_v8 }
  0x5e   : > { %2508 = vmatpush1.bf16.msra.mxu0 %v3234_v3 }
  0x5f   : > { %2534 = vmatprep.subr.bf16.mxu0 %v3127_v4  ;;  %2529 = vmatpush3.bf16.msra.mxu1 %v3247_v13 }
  0x60   : > { %2530 = vmatprep.subr.bf16.mxu1 %v3037_v8 }
  0x63   : > { %2532 = vmatpush3.bf16.msra.mxu1 %v3255_v18 }
  0x64   : > { %2565 = vmatprep.subr.bf16.mxu1 %v3037_v8 }
 0x114   : > { %v423_v20 = vpop.f32.mrb[0].mxu0 }
 0x115   : > { %v498_v21 = vadd.f32 %v423_v20, %v354_v19  ;;  %v425_v25 = vpop.f32.mrb[1].mxu0 }
 0x116   : > { %v505_v27 = vadd.f32 %v425_v25, %v355_v23  ;;  %v1953_v25 = vld [vmem:[%s1826_s4 + $0x28] sm:$0xff]  ;;  %s1985_s4 = smul.u32 4294967176, %s3022_s13 }
 0x117   : > { %v1946_v26 = vmul.f32 -1.442695, %v498_v21 }
 0x118   : > { %v1947_v28 = vmul.f32 -1.442695, %v505_v27  ;;  %s1860_s5 = scalar_lea.vmem %s3121_s28, %s1985_s4 }
 0x119   : > { %2916 = vpow2.f32 %v1946_v26  ;;  %v494_v29 = vpop.f32.mrb[0].mxu1 }
 0x11a   : > { %v2175_v31 = vpop.f32.mrb[1].mxu1  ;;  %2918 = vpow2.f32 %v1947_v28  ;;  %v518_v40 = vadd.f32 %v3303_v38, %v494_v29 }
 0x123   : > { %v2917_v32 = vpop.eup %2916 }
 0x124   : > { %v502_v34 = vadd.f32 1.0, %v2917_v32  ;;  %v2919_v37 = vpop.eup %2918 }
 0x125   : > { %v509_v39 = vadd.f32 1.0, %v2919_v37 }
 0x126   : > { %2920 = vrcp.f32 %v502_v34 }
 0x127   : > { %2922 = vrcp.f32 %v509_v39  ;;  %v1959_v39 = vld [vmem:[%s1834_s8 + $0x30] sm:$0xff] }
 0x130   : > { %v2921_v41 = vpop.eup %2920 }
 0x131   : > { %v519_v46 = vmul.f32 %v2921_v41, %v518_v40  ;;  %v2923_v48 = vpop.eup %2922 }
 0x132   : > { %v522_v49 = vsub.f32 1.0, %v2923_v48  ;;  %v524_v55 = vmul.f32 %v2923_v48, %v3244_v12 }
 0x133   : > { %v520_v47 = vadd.f32 %v519_v46, %v356_v43  ;;  %v1960_v46 = vld [vmem:[%s1834_s8 + $0x38] sm:$0xff] }
 0x135   : > { %2924 = vtanh.f32 %v520_v47 }
 0x13f   : > { %v2925_v50 = vpop.eup %2924 }
 0x140   : > { %v523_v52 = vmul.f32 %v2925_v50, %v522_v49 }
 0x142   : > { %v3309_v56 = vadd.f32 %v524_v55, %v523_v52 }
 0x144   : > { %528 = vst [vmem:[%s527_s22] sm:$0xff] %v3309_v56  ;;  %602 = vmatmul.mubr.f32.vlgmr.msra.gmra.mrb[2].mxu0 %v3309_v56  ;;  %2209 = vmatmul.mubr.f32.vlgmr.msra.gmra.mrb[2].mxu1 %v3309_v56  ;;  %s1983_s22 = smul.u32 4294967272, %s3022_s13 }
 0x145   : > { %2536 = vmatpush1.bf16.msra.mxu0 %v3134_v10  ;;  %2567 = vmatpush3.bf16.msra.mxu1 %v3167_v30 }
 0x146   : > { %2538 = vmatprep.subr.bf16.mxu0 %v3136_v11  ;;  %2568 = vmatprep.subr.bf16.mxu1 %v3037_v8  ;;  %s1856_s29 = scalar_lea.vmem %s3116_s20, %s1983_s22 }
 0x147   : > { %775 = vmatprep.mubr.f32.mxu0 %v3038_v9  ;;  %2243 = vmatprep.mubr.msk.f32.mxu1 %vm3039_vm0, %v3038_v9 }
 0x149   : > { %2540 = vmatpush1.bf16.msra.mxu0 %v3146_v16  ;;  %2570 = vmatpush3.bf16.msra.mxu1 %v3176_v35 }
 0x14a   : > { %2542 = vmatprep.subr.bf16.mxu0 %v3149_v17  ;;  %2571 = vmatprep.subr.bf16.mxu1 %v3037_v8 }
 0x14d   : > { %2544 = vmatpush1.bf16.msra.mxu0 %v3156_v22  ;;  %2573 = vmatpush3.bf16.msra.mxu1 %v3192_v44 }
 0x14e   : > { %2546 = vmatprep.subr.bf16.mxu0 %v3160_v24  ;;  %2574 = vmatprep.subr.bf16.mxu1 %v3037_v8 }
 0x151   : > { %2548 = vmatpush1.bf16.msra.mxu0 %v3172_v33  ;;  %2576 = vmatpush3.bf16.msra.mxu1 %v3208_v53 }
 0x152   : > { %2550 = vmatprep.subr.bf16.mxu0 %v3179_v36  ;;  %2577 = vmatprep.subr.bf16.mxu1 %v3037_v8 }
 0x155   : > { %2552 = vmatpush1.bf16.msra.mxu0 %v3188_v42  ;;  %2579 = vmatpush3.bf16.msra.mxu1 %v3224_v62 }
 0x156   : > { %2554 = vmatprep.subr.bf16.mxu0 %v3195_v45  ;;  %2580 = vmatprep.subr.bf16.mxu1 %v3037_v8 }
 0x159   : > { %2556 = vmatpush1.bf16.msra.mxu0 %v3204_v51  ;;  %2582 = vmatpush3.bf16.msra.mxu1 %v3237_v5 }
 0x15a   : > { %2558 = vmatprep.subr.bf16.mxu0 %v3211_v54  ;;  %2583 = vmatprep.subr.bf16.mxu1 %v3037_v8 }
 0x15d   : > { %2560 = vmatpush1.bf16.msra.mxu0 %v3220_v60  ;;  %2585 = vmatpush3.bf16.msra.mxu1 %v3247_v13 }
 0x15e   : > { %2562 = vmatprep.subr.bf16.mxu0 %v3227_v63  ;;  %2586 = vmatprep.subr.bf16.mxu1 %v3037_v8 }
 0x161   : > { %2564 = vmatpush1.bf16.msra.mxu0 %v3234_v3  ;;  %2588 = vmatpush3.bf16.msra.mxu1 %v3255_v18 }
 0x162   : > { %2590 = vmatprep.subr.bf16.mxu0 %v3127_v4  ;;  %2621 = vmatprep.subr.bf16.mxu1 %v3037_v8 }
 0x217   : > { %v603_v58 = vpop.f32.mrb[2].mxu0  ;;  %v674_v59 = vpop.f32.mrb[2].mxu1 }
 0x218   : > { %v678_v61 = vadd.f32 %v1951_v57, %v603_v58  ;;  %v605_v1 = vpop.f32.mrb[3].mxu0  ;;  %v2210_v2 = vpop.f32.mrb[3].mxu1  ;;  %v692_v21 = vadd.f32 %v3303_v38, %v674_v59 }
 0x219   : > { %v685_v7 = vadd.f32 %v1952_v0, %v605_v1  ;;  %v1961_v0 = vld [vmem:[%s1834_s8 + $0x40] sm:$0xff]  ;;  %s1993_s8 = smul.u32 4294967128, %s3022_s13 }
 0x21a   : > { %v1954_v6 = vmul.f32 -1.442695, %v678_v61 }
 0x21b   : > { %v1955_v12 = vmul.f32 -1.442695, %v685_v7  ;;  %s1868_s9 = scalar_lea.vmem %s3121_s28, %s1993_s8  ;;  %s1999_s28 = smul.u32 4294967240, %s3022_s13 }
 0x21c   : > { %2926 = vpow2.f32 %v1954_v6 }
 0x21d   : > { %2928 = vpow2.f32 %v1955_v12 }
 0x226   : > { %v2927_v14 = vpop.eup %2926 }
 0x227   : > { %v682_v15 = vadd.f32 1.0, %v2927_v14  ;;  %v2929_v19 = vpop.eup %2928 }
 0x228   : > { %v689_v20 = vadd.f32 1.0, %v2929_v19 }
 0x229   : > { %2930 = vrcp.f32 %v682_v15 }
 0x22a   : > { %2932 = vrcp.f32 %v689_v20  ;;  %v1966_v20 = vld [vmem:[%s1841_s11 + $0x48] sm:$0xff] }
 0x233   : > { %v2931_v23 = vpop.eup %2930 }
 0x234   : > { %v693_v26 = vmul.f32 %v2931_v23, %v692_v21  ;;  %v2933_v28 = vpop.eup %2932  ;;  %v1967_v21 = vld [vmem:[%s1841_s11 + $0x50] sm:$0xff] }
 0x235   : > { %v696_v29 = vsub.f32 1.0, %v2933_v28  ;;  %v698_v34 = vmul.f32 %v2933_v28, %v3309_v56 }
 0x236   : > { %v694_v27 = vadd.f32 %v1953_v25, %v693_v26 }
 0x238   : > { %2934 = vtanh.f32 %v694_v27 }
 0x242   : > { %v2935_v31 = vpop.eup %2934 }
 0x243   : > { %v697_v32 = vmul.f32 %v2935_v31, %v696_v29 }
 0x245   : > { %v3355_v37 = vadd.f32 %v698_v34, %v697_v32 }
 0x247   : > { %1957 = vst [vmem:[%s1830_s6 + $0x8] sm:$0xff] %v3355_v37  ;;  %776 = vmatmul.mubr.f32.vlgmr.msra.gmra.mrb[4].mxu0 %v3355_v37  ;;  %2244 = vmatmul.mubr.f32.vlgmr.msra.gmra.mrb[4].mxu1 %v3355_v37  ;;  %s1991_s6 = smul.u32 4294967256, %s3022_s13 }
 0x248   : > { %2592 = vmatpush1.bf16.msra.mxu0 %v3134_v10  ;;  %2623 = vmatpush3.bf16.msra.mxu1 %v3167_v30 }
 0x249   : > { %2594 = vmatprep.subr.bf16.mxu0 %v3136_v11  ;;  %2624 = vmatprep.subr.bf16.mxu1 %v3037_v8  ;;  %s1864_s7 = scalar_lea.vmem %s3116_s20, %s1991_s6 }
 0x24a   : > { %948 = vmatprep.mubr.f32.mxu0 %v3038_v9  ;;  %2278 = vmatprep.mubr.msk.f32.mxu1 %vm3039_vm0, %v3038_v9 }
 0x24c   : > { %2596 = vmatpush1.bf16.msra.mxu0 %v3146_v16  ;;  %2626 = vmatpush3.bf16.msra.mxu1 %v3176_v35 }
 0x24d   : > { %2598 = vmatprep.subr.bf16.mxu0 %v3149_v17  ;;  %2627 = vmatprep.subr.bf16.mxu1 %v3037_v8 }
 0x250   : > { %2600 = vmatpush1.bf16.msra.mxu0 %v3156_v22  ;;  %2629 = vmatpush3.bf16.msra.mxu1 %v3192_v44 }
 0x251   : > { %2602 = vmatprep.subr.bf16.mxu0 %v3160_v24  ;;  %2630 = vmatprep.subr.bf16.mxu1 %v3037_v8 }
 0x254   : > { %2604 = vmatpush1.bf16.msra.mxu0 %v3172_v33  ;;  %2632 = vmatpush3.bf16.msra.mxu1 %v3208_v53 }
 0x255   : > { %2606 = vmatprep.subr.bf16.mxu0 %v3179_v36  ;;  %2633 = vmatprep.subr.bf16.mxu1 %v3037_v8 }
 0x258   : > { %2608 = vmatpush1.bf16.msra.mxu0 %v3188_v42  ;;  %2635 = vmatpush3.bf16.msra.mxu1 %v3224_v62 }
 0x259   : > { %2610 = vmatprep.subr.bf16.mxu0 %v3195_v45  ;;  %2636 = vmatprep.subr.bf16.mxu1 %v3037_v8 }
 0x25c   : > { %2612 = vmatpush1.bf16.msra.mxu0 %v3204_v51  ;;  %2638 = vmatpush3.bf16.msra.mxu1 %v3237_v5 }
 0x25d   : > { %2614 = vmatprep.subr.bf16.mxu0 %v3211_v54  ;;  %2639 = vmatprep.subr.bf16.mxu1 %v3037_v8 }
 0x260   : > { %2616 = vmatpush1.bf16.msra.mxu0 %v3220_v60  ;;  %2641 = vmatpush3.bf16.msra.mxu1 %v3247_v13 }
 0x261   : > { %2618 = vmatprep.subr.bf16.mxu0 %v3227_v63  ;;  %2642 = vmatprep.subr.bf16.mxu1 %v3037_v8 }
 0x264   : > { %2620 = vmatpush1.bf16.msra.mxu0 %v3234_v3  ;;  %2644 = vmatpush3.bf16.msra.mxu1 %v3255_v18 }
 0x265   : > { %2646 = vmatprep.subr.bf16.mxu0 %v3127_v4  ;;  %2677 = vmatprep.subr.bf16.mxu1 %v3037_v8 }
 0x31a   : > { %v777_v40 = vpop.f32.mrb[4].mxu0  ;;  %v848_v41 = vpop.f32.mrb[4].mxu1 }
 0x31b   : > { %v852_v43 = vadd.f32 %v1959_v39, %v777_v40  ;;  %v779_v47 = vpop.f32.mrb[5].mxu0  ;;  %v2245_v48 = vpop.f32.mrb[5].mxu1  ;;  %v866_v59 = vadd.f32 %v3303_v38, %v848_v41 }
 0x31c   : > { %v859_v50 = vadd.f32 %v1960_v46, %v779_v47  ;;  %v1968_v46 = vld [vmem:[%s1841_s11 + $0x58] sm:$0xff] }
 0x31d   : > { %v1962_v49 = vmul.f32 -1.442695, %v852_v43 }
 0x31e   : > { %v1963_v52 = vmul.f32 -1.442695, %v859_v50 }
 0x31f   : > { %2936 = vpow2.f32 %v1962_v49 }
 0x320   : > { %2938 = vpow2.f32 %v1963_v52 }
 0x329   : > { %v2937_v55 = vpop.eup %2936 }
 0x32a   : > { %v856_v56 = vadd.f32 1.0, %v2937_v55  ;;  %v2939_v57 = vpop.eup %2938 }
 0x32b   : > { %v863_v58 = vadd.f32 1.0, %v2939_v57 }
 0x32c   : > { %2940 = vrcp.f32 %v856_v56 }
 0x32d   : > { %2942 = vrcp.f32 %v863_v58  ;;  %v1054_v58 = vld [vmem:[%s1053_s12] sm:$0xff] }
 0x336   : > { %v2941_v61 = vpop.eup %2940 }
 0x337   : > { %v867_v1 = vmul.f32 %v2941_v61, %v866_v59  ;;  %v2943_v6 = vpop.eup %2942 }
 0x338   : > { %v870_v7 = vsub.f32 1.0, %v2943_v6  ;;  %v872_v15 = vmul.f32 %v2943_v6, %v3355_v37 }
 0x339   : > { %v868_v2 = vadd.f32 %v1961_v0, %v867_v1  ;;  %v1055_v1 = vld [vmem:[%s1053_s12 + $0x8] sm:$0xff] }
 0x33b   : > { %2944 = vtanh.f32 %v868_v2 }
 0x345   : > { %v2945_v12 = vpop.eup %2944 }
 0x346   : > { %v871_v14 = vmul.f32 %v2945_v12, %v870_v7 }
 0x348   : > { %v3403_v19 = vadd.f32 %v872_v15, %v871_v14 }
 0x34a   : > { %949 = vmatmul.mubr.f32.vlgmr.msra.gmra.mrb[6].mxu0 %v3403_v19  ;;  %2279 = vmatmul.mubr.f32.vlgmr.msra.gmra.mrb[6].mxu1 %v3403_v19  ;;  %1965 = vst [vmem:[%s1838_s10 + $0x10] sm:$0xff] %v3403_v19  ;;  %s1872_s10 = scalar_lea.vmem %s3116_s20, %s1999_s28 }
 0x34b   : > { %2648 = vmatpush1.bf16.msra.mxu0 %v3134_v10  ;;  %2679 = vmatpush3.bf16.msra.mxu1 %v3167_v30 }
 0x34c   : > { %2650 = vmatprep.subr.bf16.mxu0 %v3136_v11  ;;  %2680 = vmatprep.subr.bf16.mxu1 %v3037_v8 }
 0x34d   : > { %1121 = vmatprep.mubr.f32.mxu0 %v3038_v9  ;;  %2313 = vmatprep.mubr.msk.f32.mxu1 %vm3039_vm0, %v3038_v9 }
 0x34f   : > { %2652 = vmatpush1.bf16.msra.mxu0 %v3146_v16  ;;  %2682 = vmatpush3.bf16.msra.mxu1 %v3176_v35 }
 0x350   : > { %2654 = vmatprep.subr.bf16.mxu0 %v3149_v17  ;;  %2683 = vmatprep.subr.bf16.mxu1 %v3037_v8 }
 0x353   : > { %2656 = vmatpush1.bf16.msra.mxu0 %v3156_v22  ;;  %2685 = vmatpush3.bf16.msra.mxu1 %v3192_v44 }
 0x354   : > { %2658 = vmatprep.subr.bf16.mxu0 %v3160_v24  ;;  %2686 = vmatprep.subr.bf16.mxu1 %v3037_v8 }
 0x357   : > { %2660 = vmatpush1.bf16.msra.mxu0 %v3172_v33  ;;  %2688 = vmatpush3.bf16.msra.mxu1 %v3208_v53 }
 0x358   : > { %2662 = vmatprep.subr.bf16.mxu0 %v3179_v36  ;;  %2689 = vmatprep.subr.bf16.mxu1 %v3037_v8 }
 0x35b   : > { %2664 = vmatpush1.bf16.msra.mxu0 %v3188_v42  ;;  %2691 = vmatpush3.bf16.msra.mxu1 %v3224_v62 }
 0x35c   : > { %2666 = vmatprep.subr.bf16.mxu0 %v3195_v45  ;;  %2692 = vmatprep.subr.bf16.mxu1 %v3037_v8 }
 0x35f   : > { %2668 = vmatpush1.bf16.msra.mxu0 %v3204_v51  ;;  %2694 = vmatpush3.bf16.msra.mxu1 %v3237_v5 }
 0x360   : > { %2670 = vmatprep.subr.bf16.mxu0 %v3211_v54  ;;  %2695 = vmatprep.subr.bf16.mxu1 %v3037_v8 }
 0x363   : > { %2672 = vmatpush1.bf16.msra.mxu0 %v3220_v60  ;;  %2697 = vmatpush3.bf16.msra.mxu1 %v3247_v13 }
 0x364   : > { %2674 = vmatprep.subr.bf16.mxu0 %v3227_v63  ;;  %2698 = vmatprep.subr.bf16.mxu1 %v3037_v8 }
 0x367   : > { %2676 = vmatpush1.bf16.msra.mxu0 %v3234_v3  ;;  %2700 = vmatpush3.bf16.msra.mxu1 %v3255_v18 }
 0x368   : > { %2702 = vmatprep.subr.bf16.mxu0 %v3127_v4  ;;  %2733 = vmatprep.subr.bf16.mxu1 %v3037_v8 }
 0x41d   : > { %v950_v23 = vpop.f32.mrb[6].mxu0  ;;  %v1021_v25 = vpop.f32.mrb[6].mxu1 }
 0x41e   : > { %v1025_v26 = vadd.f32 %v1966_v20, %v950_v23  ;;  %v952_v27 = vpop.f32.mrb[7].mxu0  ;;  %v2280_v28 = vpop.f32.mrb[7].mxu1  ;;  %v1039_v41 = vadd.f32 %v3303_v38, %v1021_v25 }
 0x41f   : > { %v1032_v29 = vadd.f32 %v1967_v21, %v952_v27 }
 0x420   : > { %v1969_v31 = vmul.f32 -1.442695, %v1025_v26  ;;  %v1056_v26 = vld [vmem:[%s1053_s12 + $0x10] sm:$0xff] }
 0x421   : > { %v1970_v32 = vmul.f32 -1.442695, %v1032_v29 }
 0x422   : > { %2946 = vpow2.f32 %v1969_v31 }
 0x423   : > { %2948 = vpow2.f32 %v1970_v32 }
 0x42c   : > { %v2947_v34 = vpop.eup %2946 }
 0x42d   : > { %v1029_v37 = vadd.f32 1.0, %v2947_v34  ;;  %v2949_v39 = vpop.eup %2948 }
 0x42e   : > { %v1036_v40 = vadd.f32 1.0, %v2949_v39 }
 0x42f   : > { %2950 = vrcp.f32 %v1029_v37 }
 0x430   : > { %2952 = vrcp.f32 %v1036_v40  ;;  %v1978_v40 = vld [vmem:[%s1852_s30 + $0x78] sm:$0xff] }
 0x439   : > { %v2951_v43 = vpop.eup %2950 }
 0x43a   : > { %v1040_v47 = vmul.f32 %v2951_v43, %v1039_v41  ;;  %v2953_v49 = vpop.eup %2952 }
 0x43b   : > { %v1043_v50 = vsub.f32 1.0, %v2953_v49  ;;  %v1045_v56 = vmul.f32 %v2953_v49, %v3403_v19 }
 0x43c   : > { %v1041_v48 = vadd.f32 %v1968_v46, %v1040_v47  ;;  %v1979_v47 = vld [vmem:[%s1852_s30 + $0x80] sm:$0xff] }
 0x43e   : > { %2954 = vtanh.f32 %v1041_v48 }
 0x448   : > { %v2955_v52 = vpop.eup %2954 }
 0x449   : > { %v1044_v55 = vmul.f32 %v2955_v52, %v1043_v50 }
 0x44b   : > { %v3450_v57 = vadd.f32 %v1045_v56, %v1044_v55 }
 0x44d   : > { %1972 = vst [vmem:[%s1844_s21 + $0x18] sm:$0xff] %v3450_v57  ;;  %1122 = vmatmul.mubr.f32.vlgmr.msra.gmra.mrb[8].mxu0 %v3450_v57  ;;  %2314 = vmatmul.mubr.f32.vlgmr.msra.gmra.mrb[8].mxu1 %v3450_v57 }
 0x44e   : > { %2704 = vmatpush1.bf16.msra.mxu0 %v3134_v10  ;;  %2735 = vmatpush3.bf16.msra.mxu1 %v3167_v30 }
 0x44f   : > { %2706 = vmatprep.subr.bf16.mxu0 %v3136_v11  ;;  %2736 = vmatprep.subr.bf16.mxu1 %v3037_v8 }
 0x450   : > { %1295 = vmatprep.mubr.f32.mxu0 %v3038_v9  ;;  %2348 = vmatprep.mubr.msk.f32.mxu1 %vm3039_vm0, %v3038_v9 }
 0x452   : > { %2708 = vmatpush1.bf16.msra.mxu0 %v3146_v16  ;;  %2738 = vmatpush3.bf16.msra.mxu1 %v3176_v35 }
 0x453   : > { %2710 = vmatprep.subr.bf16.mxu0 %v3149_v17  ;;  %2739 = vmatprep.subr.bf16.mxu1 %v3037_v8 }
 0x456   : > { %2712 = vmatpush1.bf16.msra.mxu0 %v3156_v22  ;;  %2741 = vmatpush3.bf16.msra.mxu1 %v3192_v44 }
 0x457   : > { %2714 = vmatprep.subr.bf16.mxu0 %v3160_v24  ;;  %2742 = vmatprep.subr.bf16.mxu1 %v3037_v8 }
 0x45a   : > { %2716 = vmatpush1.bf16.msra.mxu0 %v3172_v33  ;;  %2744 = vmatpush3.bf16.msra.mxu1 %v3208_v53 }
 0x45b   : > { %2718 = vmatprep.subr.bf16.mxu0 %v3179_v36  ;;  %2745 = vmatprep.subr.bf16.mxu1 %v3037_v8 }
 0x45e   : > { %2720 = vmatpush1.bf16.msra.mxu0 %v3188_v42  ;;  %2747 = vmatpush3.bf16.msra.mxu1 %v3224_v62 }
 0x45f   : > { %2722 = vmatprep.subr.bf16.mxu0 %v3195_v45  ;;  %2748 = vmatprep.subr.bf16.mxu1 %v3037_v8 }
 0x462   : > { %2724 = vmatpush1.bf16.msra.mxu0 %v3204_v51  ;;  %2750 = vmatpush3.bf16.msra.mxu1 %v3237_v5 }
 0x463   : > { %2726 = vmatprep.subr.bf16.mxu0 %v3211_v54  ;;  %2751 = vmatprep.subr.bf16.mxu1 %v3037_v8 }
 0x466   : > { %2728 = vmatpush1.bf16.msra.mxu0 %v3220_v60  ;;  %2753 = vmatpush3.bf16.msra.mxu1 %v3247_v13 }
 0x467   : > { %2730 = vmatprep.subr.bf16.mxu0 %v3227_v63  ;;  %2754 = vmatprep.subr.bf16.mxu1 %v3037_v8 }
 0x46a   : > { %2732 = vmatpush1.bf16.msra.mxu0 %v3234_v3  ;;  %2756 = vmatpush3.bf16.msra.mxu1 %v3255_v18 }
 0x46b   : > { %2758 = vmatprep.subr.bf16.mxu0 %v3127_v4  ;;  %2789 = vmatprep.subr.bf16.mxu1 %v3037_v8 }
 0x520   : > { %v1123_v59 = vpop.f32.mrb[8].mxu0  ;;  %v1194_v61 = vpop.f32.mrb[8].mxu1 }
 0x521   : > { %v1198_v0 = vadd.f32 %v1123_v59, %v1054_v58  ;;  %v1125_v2 = vpop.f32.mrb[9].mxu0  ;;  %v2315_v6 = vpop.f32.mrb[9].mxu1  ;;  %v1212_v23 = vadd.f32 %v3303_v38, %v1194_v61 }
 0x522   : > { %v1205_v12 = vadd.f32 %v1125_v2, %v1055_v1 }
 0x523   : > { %v1974_v7 = vmul.f32 -1.442695, %v1198_v0  ;;  %v1980_v0 = vld [vmem:[%s1852_s30 + $0x88] sm:$0xff] }
 0x524   : > { %v1975_v14 = vmul.f32 -1.442695, %v1205_v12 }
 0x525   : > { %2956 = vpow2.f32 %v1974_v7 }
 0x526   : > { %2958 = vpow2.f32 %v1975_v14 }
 0x52f   : > { %v2957_v15 = vpop.eup %2956 }
 0x530   : > { %v1202_v19 = vadd.f32 1.0, %v2957_v15  ;;  %v2959_v20 = vpop.eup %2958 }
 0x531   : > { %v1209_v21 = vadd.f32 1.0, %v2959_v20  ;;  %v1994_v20 = vld [vmem:[%s1868_s9 + $0xa8] sm:$0xff] }
 0x532   : > { %2960 = vrcp.f32 %v1202_v19 }
 0x533   : > { %2962 = vrcp.f32 %v1209_v21 }
 0x53c   : > { %v2961_v25 = vpop.eup %2960 }
 0x53d   : > { %v1213_v27 = vmul.f32 %v2961_v25, %v1212_v23  ;;  %v2963_v29 = vpop.eup %2962 }
 0x53e   : > { %v1216_v31 = vsub.f32 1.0, %v2963_v29  ;;  %v1218_v37 = vmul.f32 %v2963_v29, %v3450_v57 }
 0x53f   : > { %v1214_v28 = vadd.f32 %v1213_v27, %v1056_v26  ;;  %v1995_v26 = vld [vmem:[%s1868_s9 + $0xb0] sm:$0xff] }
 0x541   : > { %2964 = vtanh.f32 %v1214_v28 }
 0x54b   : > { %v2965_v32 = vpop.eup %2964 }
 0x54c   : > { %v1217_v34 = vmul.f32 %v2965_v32, %v1216_v31 }
 0x54e   : > { %v3495_v39 = vadd.f32 %v1218_v37, %v1217_v34 }
 0x550   : > { %1222 = vst [vmem:[%s1221_s25] sm:$0xff] %v3495_v39  ;;  %1296 = vmatmul.mubr.f32.vlgmr.msra.gmra.mrb[10].mxu0 %v3495_v39  ;;  %2349 = vmatmul.mubr.f32.vlgmr.msra.gmra.mrb[10].mxu1 %v3495_v39 }
 0x551   : > { %2760 = vmatpush1.bf16.msra.mxu0 %v3134_v10  ;;  %2791 = vmatpush3.bf16.msra.mxu1 %v3167_v30 }
 0x552   : > { %2762 = vmatprep.subr.bf16.mxu0 %v3136_v11  ;;  %2792 = vmatprep.subr.bf16.mxu1 %v3037_v8 }
 0x553   : > { %1469 = vmatprep.mubr.f32.mxu0 %v3038_v9  ;;  %2383 = vmatprep.mubr.msk.f32.mxu1 %vm3039_vm0, %v3038_v9 }
 0x555   : > { %2764 = vmatpush1.bf16.msra.mxu0 %v3146_v16  ;;  %2794 = vmatpush3.bf16.msra.mxu1 %v3176_v35 }
 0x556   : > { %2766 = vmatprep.subr.bf16.mxu0 %v3149_v17  ;;  %2795 = vmatprep.subr.bf16.mxu1 %v3037_v8 }
 0x559   : > { %2768 = vmatpush1.bf16.msra.mxu0 %v3156_v22  ;;  %2797 = vmatpush3.bf16.msra.mxu1 %v3192_v44 }
 0x55a   : > { %2770 = vmatprep.subr.bf16.mxu0 %v3160_v24  ;;  %2798 = vmatprep.subr.bf16.mxu1 %v3037_v8 }
 0x55d   : > { %2772 = vmatpush1.bf16.msra.mxu0 %v3172_v33  ;;  %2800 = vmatpush3.bf16.msra.mxu1 %v3208_v53 }
 0x55e   : > { %2774 = vmatprep.subr.bf16.mxu0 %v3179_v36  ;;  %2801 = vmatprep.subr.bf16.mxu1 %v3037_v8 }
 0x561   : > { %2776 = vmatpush1.bf16.msra.mxu0 %v3188_v42  ;;  %2803 = vmatpush3.bf16.msra.mxu1 %v3224_v62 }
 0x562   : > { %2778 = vmatprep.subr.bf16.mxu0 %v3195_v45  ;;  %2804 = vmatprep.subr.bf16.mxu1 %v3037_v8 }
 0x565   : > { %2780 = vmatpush1.bf16.msra.mxu0 %v3204_v51  ;;  %2806 = vmatpush3.bf16.msra.mxu1 %v3237_v5 }
 0x566   : > { %2782 = vmatprep.subr.bf16.mxu0 %v3211_v54  ;;  %2807 = vmatprep.subr.bf16.mxu1 %v3037_v8 }
 0x569   : > { %2784 = vmatpush1.bf16.msra.mxu0 %v3220_v60  ;;  %2809 = vmatpush3.bf16.msra.mxu1 %v3247_v13 }
 0x56a   : > { %2786 = vmatprep.subr.bf16.mxu0 %v3227_v63  ;;  %2810 = vmatprep.subr.bf16.mxu1 %v3037_v8 }
 0x56d   : > { %2788 = vmatpush1.bf16.msra.mxu0 %v3234_v3  ;;  %2812 = vmatpush3.bf16.msra.mxu1 %v3255_v18 }
 0x56e   : > { %2814 = vmatprep.subr.bf16.mxu0 %v3127_v4  ;;  %2845 = vmatprep.subr.bf16.mxu1 %v3037_v8 }
 0x623   : > { %v1297_v41 = vpop.f32.mrb[10].mxu0  ;;  %v1368_v43 = vpop.f32.mrb[10].mxu1 }
 0x624   : > { %v1372_v46 = vadd.f32 %v1978_v40, %v1297_v41  ;;  %v1299_v48 = vpop.f32.mrb[11].mxu0  ;;  %v2350_v49 = vpop.f32.mrb[11].mxu1  ;;  %v1386_v59 = vadd.f32 %v3303_v38, %v1368_v43 }
 0x625   : > { %v1379_v52 = vadd.f32 %v1979_v47, %v1299_v48 }
 0x626   : > { %v1981_v50 = vmul.f32 -1.442695, %v1372_v46  ;;  %v1996_v46 = vld [vmem:[%s1868_s9 + $0xb8] sm:$0xff] }
 0x627   : > { %v1982_v55 = vmul.f32 -1.442695, %v1379_v52 }
 0x628   : > { %2966 = vpow2.f32 %v1981_v50 }
 0x629   : > { %2968 = vpow2.f32 %v1982_v55 }
 0x632   : > { %v2967_v56 = vpop.eup %2966 }
 0x633   : > { %v1376_v57 = vadd.f32 1.0, %v2967_v56  ;;  %v2969_v4 = vpop.eup %2968 }
 0x634   : > { %v1383_v58 = vadd.f32 1.0, %v2969_v4 }
 0x635   : > { %2970 = vrcp.f32 %v1376_v57 }
 0x636   : > { %2972 = vrcp.f32 %v1383_v58 }
 0x63f   : > { %v2971_v61 = vpop.eup %2970 }
 0x640   : > { %v1387_v1 = vmul.f32 %v2971_v61, %v1386_v59  ;;  %v2973_v6 = vpop.eup %2972 }
 0x641   : > { %v1390_v7 = vsub.f32 1.0, %v2973_v6  ;;  %v1392_v15 = vmul.f32 %v2973_v6, %v3495_v39 }
 0x642   : > { %v1388_v2 = vadd.f32 %v1980_v0, %v1387_v1 }
 0x644   : > { %2974 = vtanh.f32 %v1388_v2 }
 0x64e   : > { %v2975_v12 = vpop.eup %2974 }
 0x64f   : > { %v1391_v14 = vmul.f32 %v2975_v12, %v1390_v7 }
 0x651   : > { %v3541_v19 = vadd.f32 %v1392_v15, %v1391_v14 }
 0x653   : > { %1984 = vst [vmem:[%s1856_s29 + $0x28] sm:$0xff] %v3541_v19  ;;  %1470 = vmatmul.mubr.f32.vlgmr.msra.gmra.mrb[12].mxu0 %v3541_v19  ;;  %2384 = vmatmul.mubr.f32.vlgmr.msra.gmra.mrb[12].mxu1 %v3541_v19 }
 0x654   : > { %2816 = vmatpush1.bf16.msra.mxu0 %v3134_v10  ;;  %2847 = vmatpush3.bf16.msra.mxu1 %v3167_v30 }
 0x655   : > { %2818 = vmatprep.subr.bf16.mxu0 %v3136_v11  ;;  %2848 = vmatprep.subr.bf16.mxu1 %v3037_v8 }
 0x656   : > { %1643 = vmatprep.mubr.f32.mxu0 %v3038_v9  ;;  %2418 = vmatprep.mubr.msk.f32.mxu1 %vm3039_vm0, %v3038_v9  ;;  %v1986_v9 = vld [vmem:[%s1860_s5 + $0x90] sm:$0xff] }
 0x658   : > { %2820 = vmatpush1.bf16.msra.mxu0 %v3146_v16  ;;  %2850 = vmatpush3.bf16.msra.mxu1 %v3176_v35 }
 0x659   : > { %2822 = vmatprep.subr.bf16.mxu0 %v3149_v17  ;;  %2851 = vmatprep.subr.bf16.mxu1 %v3037_v8  ;;  %v1987_v17 = vld [vmem:[%s1860_s5 + $0x98] sm:$0xff] }
 0x65c   : > { %2824 = vmatpush1.bf16.msra.mxu0 %v3156_v22  ;;  %2853 = vmatpush3.bf16.msra.mxu1 %v3192_v44 }
 0x65d   : > { %2826 = vmatprep.subr.bf16.mxu0 %v3160_v24  ;;  %2854 = vmatprep.subr.bf16.mxu1 %v3037_v8 }
 0x660   : > { %2828 = vmatpush1.bf16.msra.mxu0 %v3172_v33  ;;  %2856 = vmatpush3.bf16.msra.mxu1 %v3208_v53  ;;  %v1988_v53 = vld [vmem:[%s1860_s5 + $0xa0] sm:$0xff] }
 0x661   : > { %2830 = vmatprep.subr.bf16.mxu0 %v3179_v36  ;;  %2857 = vmatprep.subr.bf16.mxu1 %v3037_v8 }
 0x664   : > { %2832 = vmatpush1.bf16.msra.mxu0 %v3188_v42  ;;  %2859 = vmatpush3.bf16.msra.mxu1 %v3224_v62 }
 0x665   : > { %2834 = vmatprep.subr.bf16.mxu0 %v3195_v45  ;;  %2860 = vmatprep.subr.bf16.mxu1 %v3037_v8 }
 0x668   : > { %2836 = vmatpush1.bf16.msra.mxu0 %v3204_v51  ;;  %2862 = vmatpush3.bf16.msra.mxu1 %v3237_v5 }
 0x669   : > { %2838 = vmatprep.subr.bf16.mxu0 %v3211_v54  ;;  %2863 = vmatprep.subr.bf16.mxu1 %v3037_v8 }
 0x66c   : > { %2840 = vmatpush1.bf16.msra.mxu0 %v3220_v60  ;;  %2865 = vmatpush3.bf16.msra.mxu1 %v3247_v13 }
 0x66d   : > { %2842 = vmatprep.subr.bf16.mxu0 %v3227_v63  ;;  %2866 = vmatprep.subr.bf16.mxu1 %v3037_v8 }
 0x670   : > { %2844 = vmatpush1.bf16.msra.mxu0 %v3234_v3  ;;  %2868 = vmatpush3.bf16.msra.mxu1 %v3255_v18 }
 0x726   : > { %v1471_v10 = vpop.f32.mrb[12].mxu0  ;;  %v1542_v11 = vpop.f32.mrb[12].mxu1 }
 0x727   : > { %v1546_v16 = vadd.f32 %v1986_v9, %v1471_v10  ;;  %v1473_v22 = vpop.f32.mrb[13].mxu0  ;;  %v2385_v24 = vpop.f32.mrb[13].mxu1  ;;  %v1560_v45 = vadd.f32 %v3303_v38, %v1542_v11 }
 0x728   : > { %v1553_v33 = vadd.f32 %v1987_v17, %v1473_v22 }
 0x729   : > { %v1989_v30 = vmul.f32 -1.442695, %v1546_v16 }
 0x72a   : > { %v1990_v35 = vmul.f32 -1.442695, %v1553_v33 }
 0x72b   : > { %2976 = vpow2.f32 %v1989_v30 }
 0x72c   : > { %2978 = vpow2.f32 %v1990_v35 }
 0x735   : > { %v2977_v8 = vpop.eup %2976 }
 0x736   : > { %v1550_v36 = vadd.f32 1.0, %v2977_v8  ;;  %v2979_v42 = vpop.eup %2978 }
 0x737   : > { %v1557_v44 = vadd.f32 1.0, %v2979_v42 }
 0x738   : > { %2980 = vrcp.f32 %v1550_v36 }
 0x739   : > { %2982 = vrcp.f32 %v1557_v44 }
 0x742   : > { %v2981_v51 = vpop.eup %2980 }
 0x743   : > { %v1561_v54 = vmul.f32 %v2981_v51, %v1560_v45  ;;  %v2983_v62 = vpop.eup %2982 }
 0x744   : > { %v1564_v63 = vsub.f32 1.0, %v2983_v62  ;;  %v1566_v13 = vmul.f32 %v2983_v62, %v3541_v19 }
 0x745   : > { %v1562_v60 = vadd.f32 %v1988_v53, %v1561_v54 }
 0x747   : > { %2984 = vtanh.f32 %v1562_v60 }
 0x751   : > { %v2985_v3 = vpop.eup %2984 }
 0x752   : > { %v1565_v5 = vmul.f32 %v2985_v3, %v1564_v63 }
 0x754   : > { %v1567_v18 = vadd.f32 %v1566_v13, %v1565_v5 }
 0x756   : > { %1992 = vst [vmem:[%s1864_s7 + $0x30] sm:$0xff] %v1567_v18  ;;  %1644 = vmatmul.mubr.f32.vlgmr.msra.gmra.mrb[14].mxu0 %v1567_v18  ;;  %2419 = vmatmul.mubr.f32.vlgmr.msra.gmra.mrb[14].mxu1 %v1567_v18 }
 0x829   : > { %v1645_v21 = vpop.f32.mrb[14].mxu0  ;;  %v1716_v23 = vpop.f32.mrb[14].mxu1 }
 0x82a   : > { %v1720_v25 = vadd.f32 %v1994_v20, %v1645_v21  ;;  %v1647_v27 = vpop.f32.mrb[15].mxu0  ;;  %v2420_v28 = vpop.f32.mrb[15].mxu1  ;;  %v1734_v41 = vadd.f32 %v3303_v38, %v1716_v23 }
 0x82b   : > { %v1727_v31 = vadd.f32 %v1995_v26, %v1647_v27 }
 0x82c   : > { %v1997_v29 = vmul.f32 -1.442695, %v1720_v25 }
 0x82d   : > { %v1998_v32 = vmul.f32 -1.442695, %v1727_v31 }
 0x82e   : > { %2986 = vpow2.f32 %v1997_v29 }
 0x82f   : > { %2988 = vpow2.f32 %v1998_v32 }
 0x838   : > { %v2987_v34 = vpop.eup %2986 }
 0x839   : > { %v1724_v37 = vadd.f32 1.0, %v2987_v34  ;;  %v2989_v39 = vpop.eup %2988 }
 0x83a   : > { %v1731_v40 = vadd.f32 1.0, %v2989_v39 }
 0x83b   : > { %2990 = vrcp.f32 %v1724_v37 }
 0x83c   : > { %2992 = vrcp.f32 %v1731_v40 }
 0x845   : > { %v2991_v43 = vpop.eup %2990 }
 0x846   : > { %v1735_v47 = vmul.f32 %v2991_v43, %v1734_v41  ;;  %v2993_v49 = vpop.eup %2992 }
 0x847   : > { %v1738_v50 = vsub.f32 1.0, %v2993_v49  ;;  %v1740_v56 = vmul.f32 %v2993_v49, %v1567_v18 }
 0x848   : > { %v1736_v48 = vadd.f32 %v1996_v46, %v1735_v47 }
 0x84a   : > { %2994 = vtanh.f32 %v1736_v48 }
 0x854   : > { %v2995_v52 = vpop.eup %2994 }
 0x855   : > { %v1739_v55 = vmul.f32 %v2995_v52, %v1738_v50 }
 0x857   : > { %v1741_v57 = vadd.f32 %v1740_v56, %v1739_v55 }
 0x859   : > { %2000 = vst [vmem:[%s1872_s10 + $0x38] sm:$0xff] %v1741_v57  ;;  %1745 = vst [vmem:[#allocation2] sm:$0xff] %v1741_v57 }
 0x85a PF: > { %s13_s16 = sadd.s32 1, %s3034_s16   ;;  %s3609_s12 = smov %s3026_s14 }
 0x85b   : > { %p10_p8 = scmp.ge.s32.totalorder %s13_s16, 6   ;;  %s3610_s13 = smov %s3030_s15 }
 0x85c   : > { %s3611_s14 = smov %s3614_s17  ;;  %s3612_s15 = smov %s3618_s18 }
 0x85d   :  { %12 = sbr.rel (!%p10_p8) target bundleno = 3 (0x3), region = 88 }

</bundles_post_ra>
